<compile_context>
chip_gen: v6e
topology: v6e:2x2x1
jax: 0.10.0
libtpu: 0.0.40
codegen_flags: <defaults>
</compile_context>

<pallas_src>
import math
import functools

import jax
import jax.numpy as jnp
from jax.experimental import pallas as pl
from jax.experimental.pallas import tpu as pltpu

HIDDEN = 10          # GRU hidden size (as in the PyTorch module)
NUM_LAYERS = 2       # 2-layer GRU

_VMEM = pl.BlockSpec(memory_space=pltpu.MemorySpace.VMEM)


# ----------------------------------------------------------------------------
# Wrapper-side merged-weight construction (pure layout plumbing on params)
# ----------------------------------------------------------------------------
def _merge_layer0(layer0_params, H):
    """Block-diagonal, gate-major (r|z|n, interleaved across active subs)
    layer-0 weights.  layer0_params: list of (wi0, wh0, bi0, bh0) with
    wi0:(K,3H) wh0:(H,3H) bi0/bh0:(1,3H), gate order r|z|n."""
    na = len(layer0_params)
    HS = na * H
    Kin = sum(p[0].shape[0] for p in layer0_params)
    wi = jnp.zeros((Kin, 3 * HS), jnp.float32)
    wh = jnp.zeros((HS, 3 * HS), jnp.float32)
    bi = jnp.zeros((1, 3 * HS), jnp.float32)
    bh = jnp.zeros((1, 3 * HS), jnp.float32)
    row = 0
    for j, (wi_s, wh_s, bi_s, bh_s) in enumerate(layer0_params):
        k = wi_s.shape[0]
        for g in range(3):
            c = g * HS + j * H
            wi = wi.at[row:row + k, c:c + H].set(wi_s[:, g * H:(g + 1) * H])
            wh = wh.at[j * H:(j + 1) * H, c:c + H].set(wh_s[:, g * H:(g + 1) * H])
            bi = bi.at[:, c:c + H].set(bi_s[:, g * H:(g + 1) * H])
            bh = bh.at[:, c:c + H].set(bh_s[:, g * H:(g + 1) * H])
        row += k
    return wi, wh, bi, bh


def _merge_layer1(layer1_params, H):
    """Fuse layer-1's input-path and hidden-path matmuls into ONE weight of
    shape (2*HS, 4*HS) with column blocks [r | z | n_input | n_hidden].
    Rows 0:HS multiply h0 (layer-0 output), rows HS:2HS multiply h1 (state).
    Keeping the n gate's two paths in separate column blocks preserves the
    PyTorch GRU formula n = tanh(W_in h0 + b_in + r*(W_hn h1 + b_hn))."""
    na = len(layer1_params)
    HS = na * H
    W = jnp.zeros((2 * HS, 4 * HS), jnp.float32)
    b = jnp.zeros((1, 4 * HS), jnp.float32)
    for j, (wi_s, wh_s, bi_s, bh_s) in enumerate(layer1_params):
        h0r0, h0r1 = j * H, (j + 1) * H
        h1r0, h1r1 = HS + j * H, HS + (j + 1) * H
        for g in range(2):                       # r, z: paths genuinely fuse
            c = g * HS + j * H
            W = W.at[h0r0:h0r1, c:c + H].set(wi_s[:, g * H:(g + 1) * H])
            W = W.at[h1r0:h1r1, c:c + H].set(wh_s[:, g * H:(g + 1) * H])
            b = b.at[:, c:c + H].set(bi_s[:, g * H:(g + 1) * H]
                                     + bh_s[:, g * H:(g + 1) * H])
        c = 2 * HS + j * H                       # n gate, input path
        W = W.at[h0r0:h0r1, c:c + H].set(wi_s[:, 2 * H:3 * H])
        b = b.at[:, c:c + H].set(bi_s[:, 2 * H:3 * H])
        c = 3 * HS + j * H                       # n gate, hidden path
        W = W.at[h1r0:h1r1, c:c + H].set(wh_s[:, 2 * H:3 * H])
        b = b.at[:, c:c + H].set(bh_s[:, 2 * H:3 * H])
    return W, b


# ----------------------------------------------------------------------------
# Fused Pallas kernel: merged subsequence GRUs + linear_layer + recon_layer
# ----------------------------------------------------------------------------
def _fused_forward_kernel(phase_meta, Bp, n_sub, d_out, *refs):
    """refs = [per phase: x_ph, wi0, bi0, wh0, bh0, w1f, b1f, w1p] * n_phases
              + [b1, w2, b2] + [out_ref]

    phase_meta : tuple of (phase_len, active_sub_indices)
    x_ph  : (plen*Bp, Kin)   time-major layer-0 input, row = t_local*Bp + b
    wi0   : (Kin, 3*HS)      merged, gate-major columns (r|z|n across subs)
    wh0   : (HS, 3*HS)       merged recurrent weight (block-diagonal)
    w1f   : (2*HS, 4*HS)     fused layer-1 weight [r|z|n_in|n_hid]
    w1p   : (plen, HS, d_out) per-step rows of linear_layer.weight.T
    """
    H = HIDDEN
    n_ph = len(phase_meta)
    n_in = n_ph * 8 + 3
    in_refs = refs[:n_in]
    out_ref = refs[n_in]
    b1_ref, w2_ref, b2_ref = in_refs[n_ph * 8:]

    h0 = [jnp.zeros((Bp, H), jnp.float32) for _ in range(n_sub)]
    h1 = [jnp.zeros((Bp, H), jnp.float32) for _ in range(n_sub)]
    acc = jnp.zeros((Bp, d_out), jnp.float32)     # running feats @ w1

    for p, (plen, act) in enumerate(phase_meta):
        (x_ref, wi0_ref, bi0_ref, wh0_ref, bh0_ref,
         w1f_ref, b1f_ref, w1p_ref) = in_refs[p * 8:(p + 1) * 8]
        HS = len(act) * H

        wh0 = wh0_ref[...]
        w1f = w1f_ref[...]
        # Hoist (1,X) -> (Bp,X) bias broadcasts out of the time loop.
        bh0_b = jnp.broadcast_to(bh0_ref[...], (Bp, 3 * HS))
        b1f_b = jnp.broadcast_to(b1f_ref[...], (Bp, 4 * HS))

        # Layer-0 input projection for ALL timesteps of this phase in one
        # matmul: (plen*Bp, Kin) @ (Kin, 3*HS), input bias pre-added.
        xproj = (jnp.dot(x_ref[...], wi0_ref[...],
                         preferred_element_type=jnp.float32)
                 + bi0_ref[...])

        # Gather the (still-active) merged hidden states.
        if p == 0:
            h0a = jnp.zeros((Bp, HS), jnp.float32)
            h1a = jnp.zeros((Bp, HS), jnp.float32)
        elif len(act) == 1:
            h0a, h1a = h0[act[0]], h1[act[0]]
        else:
            h0a = jnp.concatenate([h0[s] for s in act], axis=1)
            h1a = jnp.concatenate([h1[s] for s in act], axis=1)

        for i in range(plen):   # static, fully unrolled time loop
            # ---- layer 0: one merged recurrent matmul on the serial path
            gx0 = xproj[i * Bp:(i + 1) * Bp, :]          # Bp-aligned row slice
            gh0 = jnp.dot(h0a, wh0, preferred_element_type=jnp.float32) + bh0_b
            r0 = jax.nn.sigmoid(gx0[:, 0:HS] + gh0[:, 0:HS])
            z0 = jax.nn.sigmoid(gx0[:, HS:2 * HS] + gh0[:, HS:2 * HS])
            # b_hn stays inside r*(...), exactly like torch.nn.GRU.
            n0 = jnp.tanh(gx0[:, 2 * HS:3 * HS] + r0 * gh0[:, 2 * HS:3 * HS])
            h0a = (1.0 - z0) * n0 + z0 * h0a

            # ---- layer 1: single fused matmul (input + hidden paths)
            h01 = jnp.concatenate([h0a, h1a], axis=1)    # (Bp, 2*HS)
            g1 = jnp.dot(h01, w1f, preferred_element_type=jnp.float32) + b1f_b
            r1 = jax.nn.sigmoid(g1[:, 0:HS])
            z1 = jax.nn.sigmoid(g1[:, HS:2 * HS])
            n1 = jnp.tanh(g1[:, 2 * HS:3 * HS] + r1 * g1[:, 3 * HS:4 * HS])
            h1a = (1.0 - z1) * n1 + z1 * h1a

            # ---- first Linear accumulated on the fly (off the recurrent
            # critical path; static leading index on w1p is free).
            acc = acc + jnp.dot(h1a, w1p_ref[i],
                                preferred_element_type=jnp.float32)

        # Scatter the merged state back per subsequence (used by tail phases).
        if len(act) == 1:
            h0[act[0]], h1[act[0]] = h0a, h1a
        else:
            for j, s in enumerate(act):
                h0[s] = h0a[:, j * H:(j + 1) * H]
                h1[s] = h1a[:, j * H:(j + 1) * H]

    # linear_layer bias + recon_layer, fused, no HBM roundtrip.
    hid = acc + b1_ref[...]
    out_ref[...] = (jnp.dot(hid, w2_ref[...], preferred_element_type=jnp.float32)
                    + b2_ref[...])


# ----------------------------------------------------------------------------
# Wrapper (layout plumbing only: batch padding, phase slabs, merged weights)
# ----------------------------------------------------------------------------
def forward(x, subsequences, gru_params, lin_params):
    B, d_in = x.shape
    H = HIDDEN
    n_sub = len(subsequences)
    sub_dims = [(d_in // sub, sub) for sub in subsequences]
    w1, b1, w2, b2 = lin_params
    d_out = w1.shape[1]

    # Feature offset of each subsequence block inside concatenated feats.
    feat_off, off = [], 0
    for (T, _) in sub_dims:
        feat_off.append(off)
        off += T * H

    # Pad batch to the f32 sublane count (8) -> aligned per-step slices.
    Bp = ((B + 7) // 8) * 8
    x_pad = x if Bp == B else jnp.zeros((Bp, d_in), x.dtype).at[:B, :].set(x)

    # Phases: contiguous timestep ranges sharing the same active-sub set
    # (subsequences only ever drop out as t grows).
    Tmax = max(T for T, _ in sub_dims)
    phases, t = [], 0
    while t < Tmax:
        act = tuple(s for s in range(n_sub) if sub_dims[s][0] > t)
        t_next = min(sub_dims[s][0] for s in act)
        phases.append((t, t_next, act))
        t = t_next

    inputs, phase_meta = [], []
    for (t0, t1, act) in phases:
        plen = t1 - t0
        HS = len(act) * H

        # Time-major merged layer-0 input slab for this phase.
        cols = []
        for s in act:
            T_s, sub_s = sub_dims[s]
            cols.append(x_pad[:, :T_s * sub_s]
                        .reshape(Bp, T_s, sub_s)[:, t0:t1, :])
        xph = jnp.concatenate(cols, axis=2)                 # (Bp, plen, Kin)
        xph = jnp.transpose(xph, (1, 0, 2)).reshape(plen * Bp, -1)

        wi0, wh0, bi0, bh0 = _merge_layer0([gru_params[s][:4] for s in act], H)
        w1f, b1f = _merge_layer1([gru_params[s][4:] for s in act], H)

        # Per-step rows of linear_layer.weight.T matching the merged h1 layout.
        w1p = jnp.stack(
            [jnp.concatenate(
                [w1[feat_off[s] + tt * H: feat_off[s] + (tt + 1) * H, :]
                 for s in act], axis=0)
             for tt in range(t0, t1)], axis=0)              # (plen, HS, d_out)

        inputs += [xph, wi0, bi0, wh0, bh0, w1f, b1f, w1p]
        phase_meta.append((plen, act))

    inputs += [b1, w2, b2]

    # Advisory cost estimate (helps XLA schedule around the custom call).
    flops = 2 * Bp * d_out * d_in
    transcendentals = 0
    for (t0, t1, act) in phases:
        plen = t1 - t0
        HS = len(act) * H
        Kin = sum(sub_dims[s][1] for s in act)
        flops += 2 * plen * Bp * Kin * 3 * HS                       # hoisted proj
        flops += plen * (2 * Bp * HS * 3 * HS                       # layer-0 rec
                         + 2 * Bp * (2 * HS) * (4 * HS)             # fused layer-1
                         + 2 * Bp * HS * d_out)                     # Linear accum
        transcendentals += plen * 6 * Bp * HS
    bytes_accessed = 4 * (sum(int(a.size) for a in inputs) + Bp * d_in)

    kernel = functools.partial(_fused_forward_kernel,
                               tuple(phase_meta), Bp, n_sub, d_out)

    # TODO(synk): at realistic batch sizes, add a grid over batch tiles with
    # dimension_semantics=("parallel",) so v7x's second TensorCore is used.
    out = pl.pallas_call(
        kernel,
        out_shape=jax.ShapeDtypeStruct((Bp, d_in), jnp.float32),
        in_specs=[_VMEM] * len(inputs),
        out_specs=_VMEM,
        cost_estimate=pl.CostEstimate(flops=flops,
                                      transcendentals=transcendentals,
                                      bytes_accessed=bytes_accessed),
        compiler_params=pltpu.CompilerParams(
            vmem_limit_bytes=32 * 1024 * 1024),
    )(*inputs)
    return out[:B]            # drop batch-padding rows


# ----------------------------------------------------------------------------
# Parameter construction (deterministic, mimicking the nn.Module __init__).
# Per-sub weights stored gate-concatenated: W_i (K, 3H), W_h (H, 3H),
# biases (1, 3H), gate order r | z | n (PyTorch GRU order), pre-transposed.
# ----------------------------------------------------------------------------
def _uniform(key, shape, k):
    return jax.random.uniform(key, shape, jnp.float32, minval=-k, maxval=k)


def init_params(key, d_in, d_out, subsequences):
    H = HIDDEN
    k_gru = 1.0 / math.sqrt(H)
    sub_input_dims = [(d_in // sub, sub) for sub in subsequences]

    gru_params = []
    for (_, sub) in sub_input_dims:
        layer_params = []
        for layer in range(NUM_LAYERS):
            in_dim = sub if layer == 0 else H
            key, k1, k2, k3, k4 = jax.random.split(key, 5)
            wi = _uniform(k1, (in_dim, 3 * H), k_gru)   # [W_ir|W_iz|W_in]^T
            wh = _uniform(k2, (H, 3 * H), k_gru)        # [W_hr|W_hz|W_hn]^T
            bi = _uniform(k3, (1, 3 * H), k_gru)
            bh = _uniform(k4, (1, 3 * H), k_gru)
            layer_params += [wi, wh, bi, bh]
        gru_params.append(tuple(layer_params))

    linear_in = sum(H * T for (T, _) in sub_input_dims)
    key, k1, k2, k3, k4 = jax.random.split(key, 5)
    kl = 1.0 / math.sqrt(linear_in)
    w1 = _uniform(k1, (linear_in, d_out), kl)           # linear_layer.weight.T
    b1 = _uniform(k2, (1, d_out), kl)
    kr = 1.0 / math.sqrt(d_out)
    w2 = _uniform(k3, (d_out, d_in), kr)                # recon_layer.weight.T
    b2 = _uniform(k4, (1, d_in), kr)
    return gru_params, (w1, b1, w2, b2), sub_input_dims


# ----------------------------------------------------------------------------
# Pure-JAX reference (for numerical verification)
# ----------------------------------------------------------------------------
def _cell_ref(x_t, h, wi, wh, bi, bh):
    H = HIDDEN
    gi = x_t @ wi + bi
    gh = h @ wh + bh
    r = jax.nn.sigmoid(gi[:, 0:H] + gh[:, 0:H])
    z = jax.nn.sigmoid(gi[:, H:2 * H] + gh[:, H:2 * H])
    n = jnp.tanh(gi[:, 2 * H:3 * H] + r * gh[:, 2 * H:3 * H])
    return (1.0 - z) * n + z * h


def forward_ref(x, subsequences, gru_params, lin_params):
    B, d_in = x.shape
    feats = []
    for sub, gp in zip(subsequences, gru_params):
        wi0, wh0, bi0, bh0, wi1, wh1, bi1, bh1 = gp
        T = d_in // sub
        xx = x[:, :T * sub].reshape(B, T, sub)
        h0 = jnp.zeros((B, HIDDEN), jnp.float32)
        h1 = jnp.zeros((B, HIDDEN), jnp.float32)
        ys = []
        for t in range(T):
            h0 = _cell_ref(xx[:, t, :], h0, wi0, wh0, bi0, bh0)
            h1 = _cell_ref(h0, h1, wi1, wh1, bi1, bh1)
            ys.append(h1)
        yy = jnp.stack(ys, axis=1)                     # (B, T, H)
        feats.append(yy.reshape(B, T * HIDDEN))
    y = jnp.concatenate(feats, axis=1)
    w1, b1, w2, b2 = lin_params
    return (y @ w1 + b1) @ w2 + b2


# ----------------------------------------------------------------------------
if __name__ == "__main__":
    d_in = 16          # time_window_size
    d_out = 8
    batch = 4
    # Deterministic subsequences instead of np.random.choice (the module
    # allows passing `subsequences=` explicitly).
    subsequences = [2, 4]

    key = jax.random.PRNGKey(0)
    kp, kx = jax.random.split(key)
    gru_params, lin_params, _ = init_params(kp, d_in, d_out, subsequences)
    x = jax.random.normal(kx, (batch, d_in), jnp.float32)

    out = jax.block_until_ready(forward(x, subsequences, gru_params, lin_params))
    assert out.shape == (batch, d_in), out.shape

    ref = forward_ref(x, subsequences, gru_params, lin_params)
    if not jnp.allclose(out, ref, atol=1e-3, rtol=1e-3):
        raise AssertionError(
            f"mismatch vs reference: max abs err = {jnp.max(jnp.abs(out - ref))}")

    print("KERNEL_OK")
</pallas_src>

<mosaic_0001>
module attributes {stable_mosaic.version = 11 : i64} {
  func.func @_fused_forward_kernel(%arg0: memref<32x6xf32, #tpu.memory_space<vmem>>, %arg1: memref<6x60xf32, #tpu.memory_space<vmem>>, %arg2: memref<1x60xf32, #tpu.memory_space<vmem>>, %arg3: memref<20x60xf32, #tpu.memory_space<vmem>>, %arg4: memref<1x60xf32, #tpu.memory_space<vmem>>, %arg5: memref<40x80xf32, #tpu.memory_space<vmem>>, %arg6: memref<1x80xf32, #tpu.memory_space<vmem>>, %arg7: memref<4x20x8xf32, #tpu.memory_space<vmem>>, %arg8: memref<32x2xf32, #tpu.memory_space<vmem>>, %arg9: memref<2x30xf32, #tpu.memory_space<vmem>>, %arg10: memref<1x30xf32, #tpu.memory_space<vmem>>, %arg11: memref<10x30xf32, #tpu.memory_space<vmem>>, %arg12: memref<1x30xf32, #tpu.memory_space<vmem>>, %arg13: memref<20x40xf32, #tpu.memory_space<vmem>>, %arg14: memref<1x40xf32, #tpu.memory_space<vmem>>, %arg15: memref<4x10x8xf32, #tpu.memory_space<vmem>>, %arg16: memref<1x8xf32, #tpu.memory_space<vmem>>, %arg17: memref<8x16xf32, #tpu.memory_space<vmem>>, %arg18: memref<1x16xf32, #tpu.memory_space<vmem>>, %arg19: memref<8x16xf32, #tpu.memory_space<vmem>>) attributes {dimension_semantics = [], scalar_prefetch = 0 : i64, scratch_operands = 0 : i64, tpu.core_type = #tpu.core_type<tc>} {
    %cst = arith.constant 0.000000e+00 : f32
    %0 = vector.broadcast %cst : f32 to vector<8x8xf32>
    %c0 = arith.constant 0 : index
    %c0_0 = arith.constant 0 : index
    %1 = vector.load %arg3[%c0, %c0_0] : memref<20x60xf32, #tpu.memory_space<vmem>>, vector<20x60xf32>
    %c0_1 = arith.constant 0 : index
    %c0_2 = arith.constant 0 : index
    %2 = vector.load %arg5[%c0_1, %c0_2] : memref<40x80xf32, #tpu.memory_space<vmem>>, vector<40x80xf32>
    %c0_3 = arith.constant 0 : index
    %c0_4 = arith.constant 0 : index
    %3 = vector.load %arg4[%c0_3, %c0_4] : memref<1x60xf32, #tpu.memory_space<vmem>>, vector<1x60xf32>
    %4 = vector.shape_cast %3 : vector<1x60xf32> to vector<1x60xf32>
    %5 = vector.broadcast %4 : vector<1x60xf32> to vector<8x60xf32>
    %c0_5 = arith.constant 0 : index
    %c0_6 = arith.constant 0 : index
    %6 = vector.load %arg6[%c0_5, %c0_6] : memref<1x80xf32, #tpu.memory_space<vmem>>, vector<1x80xf32>
    %7 = vector.shape_cast %6 : vector<1x80xf32> to vector<1x80xf32>
    %8 = vector.broadcast %7 : vector<1x80xf32> to vector<8x80xf32>
    %c0_7 = arith.constant 0 : index
    %c0_8 = arith.constant 0 : index
    %9 = vector.load %arg0[%c0_7, %c0_8] : memref<32x6xf32, #tpu.memory_space<vmem>>, vector<32x6xf32>
    %c0_9 = arith.constant 0 : index
    %c0_10 = arith.constant 0 : index
    %10 = vector.load %arg1[%c0_9, %c0_10] : memref<6x60xf32, #tpu.memory_space<vmem>>, vector<6x60xf32>
    %cst_11 = arith.constant dense<0.000000e+00> : vector<32x60xf32>
    %11 = tpu.matmul %9, %10, %cst_11 {dimension_numbers = #tpu.dot_dimension_numbers<[1], [0], [0], [1], [0, 0, 1, 1], [], []>} : vector<32x6xf32>, vector<6x60xf32>, vector<32x60xf32> -> vector<32x60xf32>
    %c0_12 = arith.constant 0 : index
    %c0_13 = arith.constant 0 : index
    %12 = vector.load %arg2[%c0_12, %c0_13] : memref<1x60xf32, #tpu.memory_space<vmem>>, vector<1x60xf32>
    %13 = vector.broadcast %12 : vector<1x60xf32> to vector<32x60xf32>
    %14 = arith.addf %11, %13 : vector<32x60xf32>
    %cst_14 = arith.constant 0.000000e+00 : f32
    %15 = vector.broadcast %cst_14 : f32 to vector<8x20xf32>
    %cst_15 = arith.constant 0.000000e+00 : f32
    %16 = vector.broadcast %cst_15 : f32 to vector<8x20xf32>
    %17 = vector.extract_strided_slice %14 {offsets = [0, 0], sizes = [8, 60], strides = [1, 1]} : vector<32x60xf32> to vector<8x60xf32>
    %cst_16 = arith.constant dense<0.000000e+00> : vector<8x60xf32>
    %18 = tpu.matmul %15, %1, %cst_16 {dimension_numbers = #tpu.dot_dimension_numbers<[1], [0], [0], [1], [0, 0, 1, 1], [], []>} : vector<8x20xf32>, vector<20x60xf32>, vector<8x60xf32> -> vector<8x60xf32>
    %19 = arith.addf %18, %5 : vector<8x60xf32>
    %20 = vector.extract_strided_slice %17 {offsets = [0, 0], sizes = [8, 20], strides = [1, 1]} : vector<8x60xf32> to vector<8x20xf32>
    %21 = vector.extract_strided_slice %19 {offsets = [0, 0], sizes = [8, 20], strides = [1, 1]} : vector<8x60xf32> to vector<8x20xf32>
    %22 = arith.addf %20, %21 : vector<8x20xf32>
    %23 = arith.negf %22 : vector<8x20xf32>
    %24 = math.exp %23 : vector<8x20xf32>
    %cst_17 = arith.constant 1.000000e+00 : f32
    %25 = vector.broadcast %cst_17 : f32 to vector<8x20xf32>
    %26 = arith.addf %25, %24 : vector<8x20xf32>
    %27 = arith.divf %25, %26 : vector<8x20xf32>
    %28 = vector.extract_strided_slice %17 {offsets = [0, 20], sizes = [8, 20], strides = [1, 1]} : vector<8x60xf32> to vector<8x20xf32>
    %29 = vector.extract_strided_slice %19 {offsets = [0, 20], sizes = [8, 20], strides = [1, 1]} : vector<8x60xf32> to vector<8x20xf32>
    %30 = arith.addf %28, %29 : vector<8x20xf32>
    %31 = arith.negf %30 : vector<8x20xf32>
    %32 = math.exp %31 : vector<8x20xf32>
    %cst_18 = arith.constant 1.000000e+00 : f32
    %33 = vector.broadcast %cst_18 : f32 to vector<8x20xf32>
    %34 = arith.addf %33, %32 : vector<8x20xf32>
    %35 = arith.divf %33, %34 : vector<8x20xf32>
    %36 = vector.extract_strided_slice %17 {offsets = [0, 40], sizes = [8, 20], strides = [1, 1]} : vector<8x60xf32> to vector<8x20xf32>
    %37 = vector.extract_strided_slice %19 {offsets = [0, 40], sizes = [8, 20], strides = [1, 1]} : vector<8x60xf32> to vector<8x20xf32>
    %38 = arith.mulf %27, %37 : vector<8x20xf32>
    %39 = arith.addf %36, %38 : vector<8x20xf32>
    %40 = math.tanh %39 : vector<8x20xf32>
    %cst_19 = arith.constant 1.000000e+00 : f32
    %41 = vector.broadcast %cst_19 : f32 to vector<8x20xf32>
    %42 = arith.subf %41, %35 : vector<8x20xf32>
    %43 = arith.mulf %42, %40 : vector<8x20xf32>
    %44 = arith.mulf %35, %15 : vector<8x20xf32>
    %45 = arith.addf %43, %44 : vector<8x20xf32>
    %46 = tpu.concatenate %45, %16 in 1 : vector<8x20xf32>, vector<8x20xf32> -> vector<8x40xf32>
    %cst_20 = arith.constant dense<0.000000e+00> : vector<8x80xf32>
    %47 = tpu.matmul %46, %2, %cst_20 {dimension_numbers = #tpu.dot_dimension_numbers<[1], [0], [0], [1], [0, 0, 1, 1], [], []>} : vector<8x40xf32>, vector<40x80xf32>, vector<8x80xf32> -> vector<8x80xf32>
    %48 = arith.addf %47, %8 : vector<8x80xf32>
    %49 = vector.extract_strided_slice %48 {offsets = [0, 0], sizes = [8, 20], strides = [1, 1]} : vector<8x80xf32> to vector<8x20xf32>
    %50 = arith.negf %49 : vector<8x20xf32>
    %51 = math.exp %50 : vector<8x20xf32>
    %cst_21 = arith.constant 1.000000e+00 : f32
    %52 = vector.broadcast %cst_21 : f32 to vector<8x20xf32>
    %53 = arith.addf %52, %51 : vector<8x20xf32>
    %54 = arith.divf %52, %53 : vector<8x20xf32>
    %55 = vector.extract_strided_slice %48 {offsets = [0, 20], sizes = [8, 20], strides = [1, 1]} : vector<8x80xf32> to vector<8x20xf32>
    %56 = arith.negf %55 : vector<8x20xf32>
    %57 = math.exp %56 : vector<8x20xf32>
    %cst_22 = arith.constant 1.000000e+00 : f32
    %58 = vector.broadcast %cst_22 : f32 to vector<8x20xf32>
    %59 = arith.addf %58, %57 : vector<8x20xf32>
    %60 = arith.divf %58, %59 : vector<8x20xf32>
    %61 = vector.extract_strided_slice %48 {offsets = [0, 40], sizes = [8, 20], strides = [1, 1]} : vector<8x80xf32> to vector<8x20xf32>
    %62 = vector.extract_strided_slice %48 {offsets = [0, 60], sizes = [8, 20], strides = [1, 1]} : vector<8x80xf32> to vector<8x20xf32>
    %63 = arith.mulf %54, %62 : vector<8x20xf32>
    %64 = arith.addf %61, %63 : vector<8x20xf32>
    %65 = math.tanh %64 : vector<8x20xf32>
    %cst_23 = arith.constant 1.000000e+00 : f32
    %66 = vector.broadcast %cst_23 : f32 to vector<8x20xf32>
    %67 = arith.subf %66, %60 : vector<8x20xf32>
    %68 = arith.mulf %67, %65 : vector<8x20xf32>
    %69 = arith.mulf %60, %16 : vector<8x20xf32>
    %70 = arith.addf %68, %69 : vector<8x20xf32>
    %c0_24 = arith.constant 0 : index
    %c0_25 = arith.constant 0 : index
    %c0_26 = arith.constant 0 : index
    %71 = vector.load %arg7[%c0_24, %c0_25, %c0_26] : memref<4x20x8xf32, #tpu.memory_space<vmem>>, vector<1x20x8xf32>
    %72 = vector.shape_cast %71 : vector<1x20x8xf32> to vector<20x8xf32>
    %cst_27 = arith.constant dense<0.000000e+00> : vector<8x8xf32>
    %73 = tpu.matmul %70, %72, %cst_27 {dimension_numbers = #tpu.dot_dimension_numbers<[1], [0], [0], [1], [0, 0, 1, 1], [], []>} : vector<8x20xf32>, vector<20x8xf32>, vector<8x8xf32> -> vector<8x8xf32>
    %74 = arith.addf %0, %73 : vector<8x8xf32>
    %75 = vector.extract_strided_slice %14 {offsets = [8, 0], sizes = [8, 60], strides = [1, 1]} : vector<32x60xf32> to vector<8x60xf32>
    %cst_28 = arith.constant dense<0.000000e+00> : vector<8x60xf32>
    %76 = tpu.matmul %45, %1, %cst_28 {dimension_numbers = #tpu.dot_dimension_numbers<[1], [0], [0], [1], [0, 0, 1, 1], [], []>} : vector<8x20xf32>, vector<20x60xf32>, vector<8x60xf32> -> vector<8x60xf32>
    %77 = arith.addf %76, %5 : vector<8x60xf32>
    %78 = vector.extract_strided_slice %75 {offsets = [0, 0], sizes = [8, 20], strides = [1, 1]} : vector<8x60xf32> to vector<8x20xf32>
    %79 = vector.extract_strided_slice %77 {offsets = [0, 0], sizes = [8, 20], strides = [1, 1]} : vector<8x60xf32> to vector<8x20xf32>
    %80 = arith.addf %78, %79 : vector<8x20xf32>
    %81 = arith.negf %80 : vector<8x20xf32>
    %82 = math.exp %81 : vector<8x20xf32>
    %cst_29 = arith.constant 1.000000e+00 : f32
    %83 = vector.broadcast %cst_29 : f32 to vector<8x20xf32>
    %84 = arith.addf %83, %82 : vector<8x20xf32>
    %85 = arith.divf %83, %84 : vector<8x20xf32>
    %86 = vector.extract_strided_slice %75 {offsets = [0, 20], sizes = [8, 20], strides = [1, 1]} : vector<8x60xf32> to vector<8x20xf32>
    %87 = vector.extract_strided_slice %77 {offsets = [0, 20], sizes = [8, 20], strides = [1, 1]} : vector<8x60xf32> to vector<8x20xf32>
    %88 = arith.addf %86, %87 : vector<8x20xf32>
    %89 = arith.negf %88 : vector<8x20xf32>
    %90 = math.exp %89 : vector<8x20xf32>
    %cst_30 = arith.constant 1.000000e+00 : f32
    %91 = vector.broadcast %cst_30 : f32 to vector<8x20xf32>
    %92 = arith.addf %91, %90 : vector<8x20xf32>
    %93 = arith.divf %91, %92 : vector<8x20xf32>
    %94 = vector.extract_strided_slice %75 {offsets = [0, 40], sizes = [8, 20], strides = [1, 1]} : vector<8x60xf32> to vector<8x20xf32>
    %95 = vector.extract_strided_slice %77 {offsets = [0, 40], sizes = [8, 20], strides = [1, 1]} : vector<8x60xf32> to vector<8x20xf32>
    %96 = arith.mulf %85, %95 : vector<8x20xf32>
    %97 = arith.addf %94, %96 : vector<8x20xf32>
    %98 = math.tanh %97 : vector<8x20xf32>
    %cst_31 = arith.constant 1.000000e+00 : f32
    %99 = vector.broadcast %cst_31 : f32 to vector<8x20xf32>
    %100 = arith.subf %99, %93 : vector<8x20xf32>
    %101 = arith.mulf %100, %98 : vector<8x20xf32>
    %102 = arith.mulf %93, %45 : vector<8x20xf32>
    %103 = arith.addf %101, %102 : vector<8x20xf32>
    %104 = tpu.concatenate %103, %70 in 1 : vector<8x20xf32>, vector<8x20xf32> -> vector<8x40xf32>
    %cst_32 = arith.constant dense<0.000000e+00> : vector<8x80xf32>
    %105 = tpu.matmul %104, %2, %cst_32 {dimension_numbers = #tpu.dot_dimension_numbers<[1], [0], [0], [1], [0, 0, 1, 1], [], []>} : vector<8x40xf32>, vector<40x80xf32>, vector<8x80xf32> -> vector<8x80xf32>
    %106 = arith.addf %105, %8 : vector<8x80xf32>
    %107 = vector.extract_strided_slice %106 {offsets = [0, 0], sizes = [8, 20], strides = [1, 1]} : vector<8x80xf32> to vector<8x20xf32>
    %108 = arith.negf %107 : vector<8x20xf32>
    %109 = math.exp %108 : vector<8x20xf32>
    %cst_33 = arith.constant 1.000000e+00 : f32
    %110 = vector.broadcast %cst_33 : f32 to vector<8x20xf32>
    %111 = arith.addf %110, %109 : vector<8x20xf32>
    %112 = arith.divf %110, %111 : vector<8x20xf32>
    %113 = vector.extract_strided_slice %106 {offsets = [0, 20], sizes = [8, 20], strides = [1, 1]} : vector<8x80xf32> to vector<8x20xf32>
    %114 = arith.negf %113 : vector<8x20xf32>
    %115 = math.exp %114 : vector<8x20xf32>
    %cst_34 = arith.constant 1.000000e+00 : f32
    %116 = vector.broadcast %cst_34 : f32 to vector<8x20xf32>
    %117 = arith.addf %116, %115 : vector<8x20xf32>
    %118 = arith.divf %116, %117 : vector<8x20xf32>
    %119 = vector.extract_strided_slice %106 {offsets = [0, 40], sizes = [8, 20], strides = [1, 1]} : vector<8x80xf32> to vector<8x20xf32>
    %120 = vector.extract_strided_slice %106 {offsets = [0, 60], sizes = [8, 20], strides = [1, 1]} : vector<8x80xf32> to vector<8x20xf32>
    %121 = arith.mulf %112, %120 : vector<8x20xf32>
    %122 = arith.addf %119, %121 : vector<8x20xf32>
    %123 = math.tanh %122 : vector<8x20xf32>
    %cst_35 = arith.constant 1.000000e+00 : f32
    %124 = vector.broadcast %cst_35 : f32 to vector<8x20xf32>
    %125 = arith.subf %124, %118 : vector<8x20xf32>
    %126 = arith.mulf %125, %123 : vector<8x20xf32>
    %127 = arith.mulf %118, %70 : vector<8x20xf32>
    %128 = arith.addf %126, %127 : vector<8x20xf32>
    %c1 = arith.constant 1 : index
    %c0_36 = arith.constant 0 : index
    %c0_37 = arith.constant 0 : index
    %129 = vector.load %arg7[%c1, %c0_36, %c0_37] : memref<4x20x8xf32, #tpu.memory_space<vmem>>, vector<1x20x8xf32>
    %130 = vector.shape_cast %129 : vector<1x20x8xf32> to vector<20x8xf32>
    %cst_38 = arith.constant dense<0.000000e+00> : vector<8x8xf32>
    %131 = tpu.matmul %128, %130, %cst_38 {dimension_numbers = #tpu.dot_dimension_numbers<[1], [0], [0], [1], [0, 0, 1, 1], [], []>} : vector<8x20xf32>, vector<20x8xf32>, vector<8x8xf32> -> vector<8x8xf32>
    %132 = arith.addf %74, %131 : vector<8x8xf32>
    %133 = vector.extract_strided_slice %14 {offsets = [16, 0], sizes = [8, 60], strides = [1, 1]} : vector<32x60xf32> to vector<8x60xf32>
    %cst_39 = arith.constant dense<0.000000e+00> : vector<8x60xf32>
    %134 = tpu.matmul %103, %1, %cst_39 {dimension_numbers = #tpu.dot_dimension_numbers<[1], [0], [0], [1], [0, 0, 1, 1], [], []>} : vector<8x20xf32>, vector<20x60xf32>, vector<8x60xf32> -> vector<8x60xf32>
    %135 = arith.addf %134, %5 : vector<8x60xf32>
    %136 = vector.extract_strided_slice %133 {offsets = [0, 0], sizes = [8, 20], strides = [1, 1]} : vector<8x60xf32> to vector<8x20xf32>
    %137 = vector.extract_strided_slice %135 {offsets = [0, 0], sizes = [8, 20], strides = [1, 1]} : vector<8x60xf32> to vector<8x20xf32>
    %138 = arith.addf %136, %137 : vector<8x20xf32>
    %139 = arith.negf %138 : vector<8x20xf32>
    %140 = math.exp %139 : vector<8x20xf32>
    %cst_40 = arith.constant 1.000000e+00 : f32
    %141 = vector.broadcast %cst_40 : f32 to vector<8x20xf32>
    %142 = arith.addf %141, %140 : vector<8x20xf32>
    %143 = arith.divf %141, %142 : vector<8x20xf32>
    %144 = vector.extract_strided_slice %133 {offsets = [0, 20], sizes = [8, 20], strides = [1, 1]} : vector<8x60xf32> to vector<8x20xf32>
    %145 = vector.extract_strided_slice %135 {offsets = [0, 20], sizes = [8, 20], strides = [1, 1]} : vector<8x60xf32> to vector<8x20xf32>
    %146 = arith.addf %144, %145 : vector<8x20xf32>
    %147 = arith.negf %146 : vector<8x20xf32>
    %148 = math.exp %147 : vector<8x20xf32>
    %cst_41 = arith.constant 1.000000e+00 : f32
    %149 = vector.broadcast %cst_41 : f32 to vector<8x20xf32>
    %150 = arith.addf %149, %148 : vector<8x20xf32>
    %151 = arith.divf %149, %150 : vector<8x20xf32>
    %152 = vector.extract_strided_slice %133 {offsets = [0, 40], sizes = [8, 20], strides = [1, 1]} : vector<8x60xf32> to vector<8x20xf32>
    %153 = vector.extract_strided_slice %135 {offsets = [0, 40], sizes = [8, 20], strides = [1, 1]} : vector<8x60xf32> to vector<8x20xf32>
    %154 = arith.mulf %143, %153 : vector<8x20xf32>
    %155 = arith.addf %152, %154 : vector<8x20xf32>
    %156 = math.tanh %155 : vector<8x20xf32>
    %cst_42 = arith.constant 1.000000e+00 : f32
    %157 = vector.broadcast %cst_42 : f32 to vector<8x20xf32>
    %158 = arith.subf %157, %151 : vector<8x20xf32>
    %159 = arith.mulf %158, %156 : vector<8x20xf32>
    %160 = arith.mulf %151, %103 : vector<8x20xf32>
    %161 = arith.addf %159, %160 : vector<8x20xf32>
    %162 = tpu.concatenate %161, %128 in 1 : vector<8x20xf32>, vector<8x20xf32> -> vector<8x40xf32>
    %cst_43 = arith.constant dense<0.000000e+00> : vector<8x80xf32>
    %163 = tpu.matmul %162, %2, %cst_43 {dimension_numbers = #tpu.dot_dimension_numbers<[1], [0], [0], [1], [0, 0, 1, 1], [], []>} : vector<8x40xf32>, vector<40x80xf32>, vector<8x80xf32> -> vector<8x80xf32>
    %164 = arith.addf %163, %8 : vector<8x80xf32>
    %165 = vector.extract_strided_slice %164 {offsets = [0, 0], sizes = [8, 20], strides = [1, 1]} : vector<8x80xf32> to vector<8x20xf32>
    %166 = arith.negf %165 : vector<8x20xf32>
    %167 = math.exp %166 : vector<8x20xf32>
    %cst_44 = arith.constant 1.000000e+00 : f32
    %168 = vector.broadcast %cst_44 : f32 to vector<8x20xf32>
    %169 = arith.addf %168, %167 : vector<8x20xf32>
    %170 = arith.divf %168, %169 : vector<8x20xf32>
    %171 = vector.extract_strided_slice %164 {offsets = [0, 20], sizes = [8, 20], strides = [1, 1]} : vector<8x80xf32> to vector<8x20xf32>
    %172 = arith.negf %171 : vector<8x20xf32>
    %173 = math.exp %172 : vector<8x20xf32>
    %cst_45 = arith.constant 1.000000e+00 : f32
    %174 = vector.broadcast %cst_45 : f32 to vector<8x20xf32>
    %175 = arith.addf %174, %173 : vector<8x20xf32>
    %176 = arith.divf %174, %175 : vector<8x20xf32>
    %177 = vector.extract_strided_slice %164 {offsets = [0, 40], sizes = [8, 20], strides = [1, 1]} : vector<8x80xf32> to vector<8x20xf32>
    %178 = vector.extract_strided_slice %164 {offsets = [0, 60], sizes = [8, 20], strides = [1, 1]} : vector<8x80xf32> to vector<8x20xf32>
    %179 = arith.mulf %170, %178 : vector<8x20xf32>
    %180 = arith.addf %177, %179 : vector<8x20xf32>
    %181 = math.tanh %180 : vector<8x20xf32>
    %cst_46 = arith.constant 1.000000e+00 : f32
    %182 = vector.broadcast %cst_46 : f32 to vector<8x20xf32>
    %183 = arith.subf %182, %176 : vector<8x20xf32>
    %184 = arith.mulf %183, %181 : vector<8x20xf32>
    %185 = arith.mulf %176, %128 : vector<8x20xf32>
    %186 = arith.addf %184, %185 : vector<8x20xf32>
    %c2 = arith.constant 2 : index
    %c0_47 = arith.constant 0 : index
    %c0_48 = arith.constant 0 : index
    %187 = vector.load %arg7[%c2, %c0_47, %c0_48] : memref<4x20x8xf32, #tpu.memory_space<vmem>>, vector<1x20x8xf32>
    %188 = vector.shape_cast %187 : vector<1x20x8xf32> to vector<20x8xf32>
    %cst_49 = arith.constant dense<0.000000e+00> : vector<8x8xf32>
    %189 = tpu.matmul %186, %188, %cst_49 {dimension_numbers = #tpu.dot_dimension_numbers<[1], [0], [0], [1], [0, 0, 1, 1], [], []>} : vector<8x20xf32>, vector<20x8xf32>, vector<8x8xf32> -> vector<8x8xf32>
    %190 = arith.addf %132, %189 : vector<8x8xf32>
    %191 = vector.extract_strided_slice %14 {offsets = [24, 0], sizes = [8, 60], strides = [1, 1]} : vector<32x60xf32> to vector<8x60xf32>
    %cst_50 = arith.constant dense<0.000000e+00> : vector<8x60xf32>
    %192 = tpu.matmul %161, %1, %cst_50 {dimension_numbers = #tpu.dot_dimension_numbers<[1], [0], [0], [1], [0, 0, 1, 1], [], []>} : vector<8x20xf32>, vector<20x60xf32>, vector<8x60xf32> -> vector<8x60xf32>
    %193 = arith.addf %192, %5 : vector<8x60xf32>
    %194 = vector.extract_strided_slice %191 {offsets = [0, 0], sizes = [8, 20], strides = [1, 1]} : vector<8x60xf32> to vector<8x20xf32>
    %195 = vector.extract_strided_slice %193 {offsets = [0, 0], sizes = [8, 20], strides = [1, 1]} : vector<8x60xf32> to vector<8x20xf32>
    %196 = arith.addf %194, %195 : vector<8x20xf32>
    %197 = arith.negf %196 : vector<8x20xf32>
    %198 = math.exp %197 : vector<8x20xf32>
    %cst_51 = arith.constant 1.000000e+00 : f32
    %199 = vector.broadcast %cst_51 : f32 to vector<8x20xf32>
    %200 = arith.addf %199, %198 : vector<8x20xf32>
    %201 = arith.divf %199, %200 : vector<8x20xf32>
    %202 = vector.extract_strided_slice %191 {offsets = [0, 20], sizes = [8, 20], strides = [1, 1]} : vector<8x60xf32> to vector<8x20xf32>
    %203 = vector.extract_strided_slice %193 {offsets = [0, 20], sizes = [8, 20], strides = [1, 1]} : vector<8x60xf32> to vector<8x20xf32>
    %204 = arith.addf %202, %203 : vector<8x20xf32>
    %205 = arith.negf %204 : vector<8x20xf32>
    %206 = math.exp %205 : vector<8x20xf32>
    %cst_52 = arith.constant 1.000000e+00 : f32
    %207 = vector.broadcast %cst_52 : f32 to vector<8x20xf32>
    %208 = arith.addf %207, %206 : vector<8x20xf32>
    %209 = arith.divf %207, %208 : vector<8x20xf32>
    %210 = vector.extract_strided_slice %191 {offsets = [0, 40], sizes = [8, 20], strides = [1, 1]} : vector<8x60xf32> to vector<8x20xf32>
    %211 = vector.extract_strided_slice %193 {offsets = [0, 40], sizes = [8, 20], strides = [1, 1]} : vector<8x60xf32> to vector<8x20xf32>
    %212 = arith.mulf %201, %211 : vector<8x20xf32>
    %213 = arith.addf %210, %212 : vector<8x20xf32>
    %214 = math.tanh %213 : vector<8x20xf32>
    %cst_53 = arith.constant 1.000000e+00 : f32
    %215 = vector.broadcast %cst_53 : f32 to vector<8x20xf32>
    %216 = arith.subf %215, %209 : vector<8x20xf32>
    %217 = arith.mulf %216, %214 : vector<8x20xf32>
    %218 = arith.mulf %209, %161 : vector<8x20xf32>
    %219 = arith.addf %217, %218 : vector<8x20xf32>
    %220 = tpu.concatenate %219, %186 in 1 : vector<8x20xf32>, vector<8x20xf32> -> vector<8x40xf32>
    %cst_54 = arith.constant dense<0.000000e+00> : vector<8x80xf32>
    %221 = tpu.matmul %220, %2, %cst_54 {dimension_numbers = #tpu.dot_dimension_numbers<[1], [0], [0], [1], [0, 0, 1, 1], [], []>} : vector<8x40xf32>, vector<40x80xf32>, vector<8x80xf32> -> vector<8x80xf32>
    %222 = arith.addf %221, %8 : vector<8x80xf32>
    %223 = vector.extract_strided_slice %222 {offsets = [0, 0], sizes = [8, 20], strides = [1, 1]} : vector<8x80xf32> to vector<8x20xf32>
    %224 = arith.negf %223 : vector<8x20xf32>
    %225 = math.exp %224 : vector<8x20xf32>
    %cst_55 = arith.constant 1.000000e+00 : f32
    %226 = vector.broadcast %cst_55 : f32 to vector<8x20xf32>
    %227 = arith.addf %226, %225 : vector<8x20xf32>
    %228 = arith.divf %226, %227 : vector<8x20xf32>
    %229 = vector.extract_strided_slice %222 {offsets = [0, 20], sizes = [8, 20], strides = [1, 1]} : vector<8x80xf32> to vector<8x20xf32>
    %230 = arith.negf %229 : vector<8x20xf32>
    %231 = math.exp %230 : vector<8x20xf32>
    %cst_56 = arith.constant 1.000000e+00 : f32
    %232 = vector.broadcast %cst_56 : f32 to vector<8x20xf32>
    %233 = arith.addf %232, %231 : vector<8x20xf32>
    %234 = arith.divf %232, %233 : vector<8x20xf32>
    %235 = vector.extract_strided_slice %222 {offsets = [0, 40], sizes = [8, 20], strides = [1, 1]} : vector<8x80xf32> to vector<8x20xf32>
    %236 = vector.extract_strided_slice %222 {offsets = [0, 60], sizes = [8, 20], strides = [1, 1]} : vector<8x80xf32> to vector<8x20xf32>
    %237 = arith.mulf %228, %236 : vector<8x20xf32>
    %238 = arith.addf %235, %237 : vector<8x20xf32>
    %239 = math.tanh %238 : vector<8x20xf32>
    %cst_57 = arith.constant 1.000000e+00 : f32
    %240 = vector.broadcast %cst_57 : f32 to vector<8x20xf32>
    %241 = arith.subf %240, %234 : vector<8x20xf32>
    %242 = arith.mulf %241, %239 : vector<8x20xf32>
    %243 = arith.mulf %234, %186 : vector<8x20xf32>
    %244 = arith.addf %242, %243 : vector<8x20xf32>
    %c3 = arith.constant 3 : index
    %c0_58 = arith.constant 0 : index
    %c0_59 = arith.constant 0 : index
    %245 = vector.load %arg7[%c3, %c0_58, %c0_59] : memref<4x20x8xf32, #tpu.memory_space<vmem>>, vector<1x20x8xf32>
    %246 = vector.shape_cast %245 : vector<1x20x8xf32> to vector<20x8xf32>
    %cst_60 = arith.constant dense<0.000000e+00> : vector<8x8xf32>
    %247 = tpu.matmul %244, %246, %cst_60 {dimension_numbers = #tpu.dot_dimension_numbers<[1], [0], [0], [1], [0, 0, 1, 1], [], []>} : vector<8x20xf32>, vector<20x8xf32>, vector<8x8xf32> -> vector<8x8xf32>
    %248 = arith.addf %190, %247 : vector<8x8xf32>
    %249 = vector.extract_strided_slice %219 {offsets = [0, 0], sizes = [8, 10], strides = [1, 1]} : vector<8x20xf32> to vector<8x10xf32>
    %250 = vector.extract_strided_slice %244 {offsets = [0, 0], sizes = [8, 10], strides = [1, 1]} : vector<8x20xf32> to vector<8x10xf32>
    %c0_61 = arith.constant 0 : index
    %c0_62 = arith.constant 0 : index
    %251 = vector.load %arg11[%c0_61, %c0_62] : memref<10x30xf32, #tpu.memory_space<vmem>>, vector<10x30xf32>
    %c0_63 = arith.constant 0 : index
    %c0_64 = arith.constant 0 : index
    %252 = vector.load %arg13[%c0_63, %c0_64] : memref<20x40xf32, #tpu.memory_space<vmem>>, vector<20x40xf32>
    %c0_65 = arith.constant 0 : index
    %c0_66 = arith.constant 0 : index
    %253 = vector.load %arg12[%c0_65, %c0_66] : memref<1x30xf32, #tpu.memory_space<vmem>>, vector<1x30xf32>
    %254 = vector.shape_cast %253 : vector<1x30xf32> to vector<1x30xf32>
    %255 = vector.broadcast %254 : vector<1x30xf32> to vector<8x30xf32>
    %c0_67 = arith.constant 0 : index
    %c0_68 = arith.constant 0 : index
    %256 = vector.load %arg14[%c0_67, %c0_68] : memref<1x40xf32, #tpu.memory_space<vmem>>, vector<1x40xf32>
    %257 = vector.shape_cast %256 : vector<1x40xf32> to vector<1x40xf32>
    %258 = vector.broadcast %257 : vector<1x40xf32> to vector<8x40xf32>
    %c0_69 = arith.constant 0 : index
    %c0_70 = arith.constant 0 : index
    %259 = vector.load %arg8[%c0_69, %c0_70] : memref<32x2xf32, #tpu.memory_space<vmem>>, vector<32x2xf32>
    %c0_71 = arith.constant 0 : index
    %c0_72 = arith.constant 0 : index
    %260 = vector.load %arg9[%c0_71, %c0_72] : memref<2x30xf32, #tpu.memory_space<vmem>>, vector<2x30xf32>
    %cst_73 = arith.constant dense<0.000000e+00> : vector<32x30xf32>
    %261 = tpu.matmul %259, %260, %cst_73 {dimension_numbers = #tpu.dot_dimension_numbers<[1], [0], [0], [1], [0, 0, 1, 1], [], []>} : vector<32x2xf32>, vector<2x30xf32>, vector<32x30xf32> -> vector<32x30xf32>
    %c0_74 = arith.constant 0 : index
    %c0_75 = arith.constant 0 : index
    %262 = vector.load %arg10[%c0_74, %c0_75] : memref<1x30xf32, #tpu.memory_space<vmem>>, vector<1x30xf32>
    %263 = vector.broadcast %262 : vector<1x30xf32> to vector<32x30xf32>
    %264 = arith.addf %261, %263 : vector<32x30xf32>
    %265 = vector.extract_strided_slice %264 {offsets = [0, 0], sizes = [8, 30], strides = [1, 1]} : vector<32x30xf32> to vector<8x30xf32>
    %cst_76 = arith.constant dense<0.000000e+00> : vector<8x30xf32>
    %266 = tpu.matmul %249, %251, %cst_76 {dimension_numbers = #tpu.dot_dimension_numbers<[1], [0], [0], [1], [0, 0, 1, 1], [], []>} : vector<8x10xf32>, vector<10x30xf32>, vector<8x30xf32> -> vector<8x30xf32>
    %267 = arith.addf %266, %255 : vector<8x30xf32>
    %268 = vector.extract_strided_slice %265 {offsets = [0, 0], sizes = [8, 10], strides = [1, 1]} : vector<8x30xf32> to vector<8x10xf32>
    %269 = vector.extract_strided_slice %267 {offsets = [0, 0], sizes = [8, 10], strides = [1, 1]} : vector<8x30xf32> to vector<8x10xf32>
    %270 = arith.addf %268, %269 : vector<8x10xf32>
    %271 = arith.negf %270 : vector<8x10xf32>
    %272 = math.exp %271 : vector<8x10xf32>
    %cst_77 = arith.constant 1.000000e+00 : f32
    %273 = vector.broadcast %cst_77 : f32 to vector<8x10xf32>
    %274 = arith.addf %273, %272 : vector<8x10xf32>
    %275 = arith.divf %273, %274 : vector<8x10xf32>
    %276 = vector.extract_strided_slice %265 {offsets = [0, 10], sizes = [8, 10], strides = [1, 1]} : vector<8x30xf32> to vector<8x10xf32>
    %277 = vector.extract_strided_slice %267 {offsets = [0, 10], sizes = [8, 10], strides = [1, 1]} : vector<8x30xf32> to vector<8x10xf32>
    %278 = arith.addf %276, %277 : vector<8x10xf32>
    %279 = arith.negf %278 : vector<8x10xf32>
    %280 = math.exp %279 : vector<8x10xf32>
    %cst_78 = arith.constant 1.000000e+00 : f32
    %281 = vector.broadcast %cst_78 : f32 to vector<8x10xf32>
    %282 = arith.addf %281, %280 : vector<8x10xf32>
    %283 = arith.divf %281, %282 : vector<8x10xf32>
    %284 = vector.extract_strided_slice %265 {offsets = [0, 20], sizes = [8, 10], strides = [1, 1]} : vector<8x30xf32> to vector<8x10xf32>
    %285 = vector.extract_strided_slice %267 {offsets = [0, 20], sizes = [8, 10], strides = [1, 1]} : vector<8x30xf32> to vector<8x10xf32>
    %286 = arith.mulf %275, %285 : vector<8x10xf32>
    %287 = arith.addf %284, %286 : vector<8x10xf32>
    %288 = math.tanh %287 : vector<8x10xf32>
    %cst_79 = arith.constant 1.000000e+00 : f32
    %289 = vector.broadcast %cst_79 : f32 to vector<8x10xf32>
    %290 = arith.subf %289, %283 : vector<8x10xf32>
    %291 = arith.mulf %290, %288 : vector<8x10xf32>
    %292 = arith.mulf %283, %249 : vector<8x10xf32>
    %293 = arith.addf %291, %292 : vector<8x10xf32>
    %294 = tpu.concatenate %293, %250 in 1 : vector<8x10xf32>, vector<8x10xf32> -> vector<8x20xf32>
    %cst_80 = arith.constant dense<0.000000e+00> : vector<8x40xf32>
    %295 = tpu.matmul %294, %252, %cst_80 {dimension_numbers = #tpu.dot_dimension_numbers<[1], [0], [0], [1], [0, 0, 1, 1], [], []>} : vector<8x20xf32>, vector<20x40xf32>, vector<8x40xf32> -> vector<8x40xf32>
    %296 = arith.addf %295, %258 : vector<8x40xf32>
    %297 = vector.extract_strided_slice %296 {offsets = [0, 0], sizes = [8, 10], strides = [1, 1]} : vector<8x40xf32> to vector<8x10xf32>
    %298 = arith.negf %297 : vector<8x10xf32>
    %299 = math.exp %298 : vector<8x10xf32>
    %cst_81 = arith.constant 1.000000e+00 : f32
    %300 = vector.broadcast %cst_81 : f32 to vector<8x10xf32>
    %301 = arith.addf %300, %299 : vector<8x10xf32>
    %302 = arith.divf %300, %301 : vector<8x10xf32>
    %303 = vector.extract_strided_slice %296 {offsets = [0, 10], sizes = [8, 10], strides = [1, 1]} : vector<8x40xf32> to vector<8x10xf32>
    %304 = arith.negf %303 : vector<8x10xf32>
    %305 = math.exp %304 : vector<8x10xf32>
    %cst_82 = arith.constant 1.000000e+00 : f32
    %306 = vector.broadcast %cst_82 : f32 to vector<8x10xf32>
    %307 = arith.addf %306, %305 : vector<8x10xf32>
    %308 = arith.divf %306, %307 : vector<8x10xf32>
    %309 = vector.extract_strided_slice %296 {offsets = [0, 20], sizes = [8, 10], strides = [1, 1]} : vector<8x40xf32> to vector<8x10xf32>
    %310 = vector.extract_strided_slice %296 {offsets = [0, 30], sizes = [8, 10], strides = [1, 1]} : vector<8x40xf32> to vector<8x10xf32>
    %311 = arith.mulf %302, %310 : vector<8x10xf32>
    %312 = arith.addf %309, %311 : vector<8x10xf32>
    %313 = math.tanh %312 : vector<8x10xf32>
    %cst_83 = arith.constant 1.000000e+00 : f32
    %314 = vector.broadcast %cst_83 : f32 to vector<8x10xf32>
    %315 = arith.subf %314, %308 : vector<8x10xf32>
    %316 = arith.mulf %315, %313 : vector<8x10xf32>
    %317 = arith.mulf %308, %250 : vector<8x10xf32>
    %318 = arith.addf %316, %317 : vector<8x10xf32>
    %c0_84 = arith.constant 0 : index
    %c0_85 = arith.constant 0 : index
    %c0_86 = arith.constant 0 : index
    %319 = vector.load %arg15[%c0_84, %c0_85, %c0_86] : memref<4x10x8xf32, #tpu.memory_space<vmem>>, vector<1x10x8xf32>
    %320 = vector.shape_cast %319 : vector<1x10x8xf32> to vector<10x8xf32>
    %cst_87 = arith.constant dense<0.000000e+00> : vector<8x8xf32>
    %321 = tpu.matmul %318, %320, %cst_87 {dimension_numbers = #tpu.dot_dimension_numbers<[1], [0], [0], [1], [0, 0, 1, 1], [], []>} : vector<8x10xf32>, vector<10x8xf32>, vector<8x8xf32> -> vector<8x8xf32>
    %322 = arith.addf %248, %321 : vector<8x8xf32>
    %323 = vector.extract_strided_slice %264 {offsets = [8, 0], sizes = [8, 30], strides = [1, 1]} : vector<32x30xf32> to vector<8x30xf32>
    %cst_88 = arith.constant dense<0.000000e+00> : vector<8x30xf32>
    %324 = tpu.matmul %293, %251, %cst_88 {dimension_numbers = #tpu.dot_dimension_numbers<[1], [0], [0], [1], [0, 0, 1, 1], [], []>} : vector<8x10xf32>, vector<10x30xf32>, vector<8x30xf32> -> vector<8x30xf32>
    %325 = arith.addf %324, %255 : vector<8x30xf32>
    %326 = vector.extract_strided_slice %323 {offsets = [0, 0], sizes = [8, 10], strides = [1, 1]} : vector<8x30xf32> to vector<8x10xf32>
    %327 = vector.extract_strided_slice %325 {offsets = [0, 0], sizes = [8, 10], strides = [1, 1]} : vector<8x30xf32> to vector<8x10xf32>
    %328 = arith.addf %326, %327 : vector<8x10xf32>
    %329 = arith.negf %328 : vector<8x10xf32>
    %330 = math.exp %329 : vector<8x10xf32>
    %cst_89 = arith.constant 1.000000e+00 : f32
    %331 = vector.broadcast %cst_89 : f32 to vector<8x10xf32>
    %332 = arith.addf %331, %330 : vector<8x10xf32>
    %333 = arith.divf %331, %332 : vector<8x10xf32>
    %334 = vector.extract_strided_slice %323 {offsets = [0, 10], sizes = [8, 10], strides = [1, 1]} : vector<8x30xf32> to vector<8x10xf32>
    %335 = vector.extract_strided_slice %325 {offsets = [0, 10], sizes = [8, 10], strides = [1, 1]} : vector<8x30xf32> to vector<8x10xf32>
    %336 = arith.addf %334, %335 : vector<8x10xf32>
    %337 = arith.negf %336 : vector<8x10xf32>
    %338 = math.exp %337 : vector<8x10xf32>
    %cst_90 = arith.constant 1.000000e+00 : f32
    %339 = vector.broadcast %cst_90 : f32 to vector<8x10xf32>
    %340 = arith.addf %339, %338 : vector<8x10xf32>
    %341 = arith.divf %339, %340 : vector<8x10xf32>
    %342 = vector.extract_strided_slice %323 {offsets = [0, 20], sizes = [8, 10], strides = [1, 1]} : vector<8x30xf32> to vector<8x10xf32>
    %343 = vector.extract_strided_slice %325 {offsets = [0, 20], sizes = [8, 10], strides = [1, 1]} : vector<8x30xf32> to vector<8x10xf32>
    %344 = arith.mulf %333, %343 : vector<8x10xf32>
    %345 = arith.addf %342, %344 : vector<8x10xf32>
    %346 = math.tanh %345 : vector<8x10xf32>
    %cst_91 = arith.constant 1.000000e+00 : f32
    %347 = vector.broadcast %cst_91 : f32 to vector<8x10xf32>
    %348 = arith.subf %347, %341 : vector<8x10xf32>
    %349 = arith.mulf %348, %346 : vector<8x10xf32>
    %350 = arith.mulf %341, %293 : vector<8x10xf32>
    %351 = arith.addf %349, %350 : vector<8x10xf32>
    %352 = tpu.concatenate %351, %318 in 1 : vector<8x10xf32>, vector<8x10xf32> -> vector<8x20xf32>
    %cst_92 = arith.constant dense<0.000000e+00> : vector<8x40xf32>
    %353 = tpu.matmul %352, %252, %cst_92 {dimension_numbers = #tpu.dot_dimension_numbers<[1], [0], [0], [1], [0, 0, 1, 1], [], []>} : vector<8x20xf32>, vector<20x40xf32>, vector<8x40xf32> -> vector<8x40xf32>
    %354 = arith.addf %353, %258 : vector<8x40xf32>
    %355 = vector.extract_strided_slice %354 {offsets = [0, 0], sizes = [8, 10], strides = [1, 1]} : vector<8x40xf32> to vector<8x10xf32>
    %356 = arith.negf %355 : vector<8x10xf32>
    %357 = math.exp %356 : vector<8x10xf32>
    %cst_93 = arith.constant 1.000000e+00 : f32
    %358 = vector.broadcast %cst_93 : f32 to vector<8x10xf32>
    %359 = arith.addf %358, %357 : vector<8x10xf32>
    %360 = arith.divf %358, %359 : vector<8x10xf32>
    %361 = vector.extract_strided_slice %354 {offsets = [0, 10], sizes = [8, 10], strides = [1, 1]} : vector<8x40xf32> to vector<8x10xf32>
    %362 = arith.negf %361 : vector<8x10xf32>
    %363 = math.exp %362 : vector<8x10xf32>
    %cst_94 = arith.constant 1.000000e+00 : f32
    %364 = vector.broadcast %cst_94 : f32 to vector<8x10xf32>
    %365 = arith.addf %364, %363 : vector<8x10xf32>
    %366 = arith.divf %364, %365 : vector<8x10xf32>
    %367 = vector.extract_strided_slice %354 {offsets = [0, 20], sizes = [8, 10], strides = [1, 1]} : vector<8x40xf32> to vector<8x10xf32>
    %368 = vector.extract_strided_slice %354 {offsets = [0, 30], sizes = [8, 10], strides = [1, 1]} : vector<8x40xf32> to vector<8x10xf32>
    %369 = arith.mulf %360, %368 : vector<8x10xf32>
    %370 = arith.addf %367, %369 : vector<8x10xf32>
    %371 = math.tanh %370 : vector<8x10xf32>
    %cst_95 = arith.constant 1.000000e+00 : f32
    %372 = vector.broadcast %cst_95 : f32 to vector<8x10xf32>
    %373 = arith.subf %372, %366 : vector<8x10xf32>
    %374 = arith.mulf %373, %371 : vector<8x10xf32>
    %375 = arith.mulf %366, %318 : vector<8x10xf32>
    %376 = arith.addf %374, %375 : vector<8x10xf32>
    %c1_96 = arith.constant 1 : index
    %c0_97 = arith.constant 0 : index
    %c0_98 = arith.constant 0 : index
    %377 = vector.load %arg15[%c1_96, %c0_97, %c0_98] : memref<4x10x8xf32, #tpu.memory_space<vmem>>, vector<1x10x8xf32>
    %378 = vector.shape_cast %377 : vector<1x10x8xf32> to vector<10x8xf32>
    %cst_99 = arith.constant dense<0.000000e+00> : vector<8x8xf32>
    %379 = tpu.matmul %376, %378, %cst_99 {dimension_numbers = #tpu.dot_dimension_numbers<[1], [0], [0], [1], [0, 0, 1, 1], [], []>} : vector<8x10xf32>, vector<10x8xf32>, vector<8x8xf32> -> vector<8x8xf32>
    %380 = arith.addf %322, %379 : vector<8x8xf32>
    %381 = vector.extract_strided_slice %264 {offsets = [16, 0], sizes = [8, 30], strides = [1, 1]} : vector<32x30xf32> to vector<8x30xf32>
    %cst_100 = arith.constant dense<0.000000e+00> : vector<8x30xf32>
    %382 = tpu.matmul %351, %251, %cst_100 {dimension_numbers = #tpu.dot_dimension_numbers<[1], [0], [0], [1], [0, 0, 1, 1], [], []>} : vector<8x10xf32>, vector<10x30xf32>, vector<8x30xf32> -> vector<8x30xf32>
    %383 = arith.addf %382, %255 : vector<8x30xf32>
    %384 = vector.extract_strided_slice %381 {offsets = [0, 0], sizes = [8, 10], strides = [1, 1]} : vector<8x30xf32> to vector<8x10xf32>
    %385 = vector.extract_strided_slice %383 {offsets = [0, 0], sizes = [8, 10], strides = [1, 1]} : vector<8x30xf32> to vector<8x10xf32>
    %386 = arith.addf %384, %385 : vector<8x10xf32>
    %387 = arith.negf %386 : vector<8x10xf32>
    %388 = math.exp %387 : vector<8x10xf32>
    %cst_101 = arith.constant 1.000000e+00 : f32
    %389 = vector.broadcast %cst_101 : f32 to vector<8x10xf32>
    %390 = arith.addf %389, %388 : vector<8x10xf32>
    %391 = arith.divf %389, %390 : vector<8x10xf32>
    %392 = vector.extract_strided_slice %381 {offsets = [0, 10], sizes = [8, 10], strides = [1, 1]} : vector<8x30xf32> to vector<8x10xf32>
    %393 = vector.extract_strided_slice %383 {offsets = [0, 10], sizes = [8, 10], strides = [1, 1]} : vector<8x30xf32> to vector<8x10xf32>
    %394 = arith.addf %392, %393 : vector<8x10xf32>
    %395 = arith.negf %394 : vector<8x10xf32>
    %396 = math.exp %395 : vector<8x10xf32>
    %cst_102 = arith.constant 1.000000e+00 : f32
    %397 = vector.broadcast %cst_102 : f32 to vector<8x10xf32>
    %398 = arith.addf %397, %396 : vector<8x10xf32>
    %399 = arith.divf %397, %398 : vector<8x10xf32>
    %400 = vector.extract_strided_slice %381 {offsets = [0, 20], sizes = [8, 10], strides = [1, 1]} : vector<8x30xf32> to vector<8x10xf32>
    %401 = vector.extract_strided_slice %383 {offsets = [0, 20], sizes = [8, 10], strides = [1, 1]} : vector<8x30xf32> to vector<8x10xf32>
    %402 = arith.mulf %391, %401 : vector<8x10xf32>
    %403 = arith.addf %400, %402 : vector<8x10xf32>
    %404 = math.tanh %403 : vector<8x10xf32>
    %cst_103 = arith.constant 1.000000e+00 : f32
    %405 = vector.broadcast %cst_103 : f32 to vector<8x10xf32>
    %406 = arith.subf %405, %399 : vector<8x10xf32>
    %407 = arith.mulf %406, %404 : vector<8x10xf32>
    %408 = arith.mulf %399, %351 : vector<8x10xf32>
    %409 = arith.addf %407, %408 : vector<8x10xf32>
    %410 = tpu.concatenate %409, %376 in 1 : vector<8x10xf32>, vector<8x10xf32> -> vector<8x20xf32>
    %cst_104 = arith.constant dense<0.000000e+00> : vector<8x40xf32>
    %411 = tpu.matmul %410, %252, %cst_104 {dimension_numbers = #tpu.dot_dimension_numbers<[1], [0], [0], [1], [0, 0, 1, 1], [], []>} : vector<8x20xf32>, vector<20x40xf32>, vector<8x40xf32> -> vector<8x40xf32>
    %412 = arith.addf %411, %258 : vector<8x40xf32>
    %413 = vector.extract_strided_slice %412 {offsets = [0, 0], sizes = [8, 10], strides = [1, 1]} : vector<8x40xf32> to vector<8x10xf32>
    %414 = arith.negf %413 : vector<8x10xf32>
    %415 = math.exp %414 : vector<8x10xf32>
    %cst_105 = arith.constant 1.000000e+00 : f32
    %416 = vector.broadcast %cst_105 : f32 to vector<8x10xf32>
    %417 = arith.addf %416, %415 : vector<8x10xf32>
    %418 = arith.divf %416, %417 : vector<8x10xf32>
    %419 = vector.extract_strided_slice %412 {offsets = [0, 10], sizes = [8, 10], strides = [1, 1]} : vector<8x40xf32> to vector<8x10xf32>
    %420 = arith.negf %419 : vector<8x10xf32>
    %421 = math.exp %420 : vector<8x10xf32>
    %cst_106 = arith.constant 1.000000e+00 : f32
    %422 = vector.broadcast %cst_106 : f32 to vector<8x10xf32>
    %423 = arith.addf %422, %421 : vector<8x10xf32>
    %424 = arith.divf %422, %423 : vector<8x10xf32>
    %425 = vector.extract_strided_slice %412 {offsets = [0, 20], sizes = [8, 10], strides = [1, 1]} : vector<8x40xf32> to vector<8x10xf32>
    %426 = vector.extract_strided_slice %412 {offsets = [0, 30], sizes = [8, 10], strides = [1, 1]} : vector<8x40xf32> to vector<8x10xf32>
    %427 = arith.mulf %418, %426 : vector<8x10xf32>
    %428 = arith.addf %425, %427 : vector<8x10xf32>
    %429 = math.tanh %428 : vector<8x10xf32>
    %cst_107 = arith.constant 1.000000e+00 : f32
    %430 = vector.broadcast %cst_107 : f32 to vector<8x10xf32>
    %431 = arith.subf %430, %424 : vector<8x10xf32>
    %432 = arith.mulf %431, %429 : vector<8x10xf32>
    %433 = arith.mulf %424, %376 : vector<8x10xf32>
    %434 = arith.addf %432, %433 : vector<8x10xf32>
    %c2_108 = arith.constant 2 : index
    %c0_109 = arith.constant 0 : index
    %c0_110 = arith.constant 0 : index
    %435 = vector.load %arg15[%c2_108, %c0_109, %c0_110] : memref<4x10x8xf32, #tpu.memory_space<vmem>>, vector<1x10x8xf32>
    %436 = vector.shape_cast %435 : vector<1x10x8xf32> to vector<10x8xf32>
    %cst_111 = arith.constant dense<0.000000e+00> : vector<8x8xf32>
    %437 = tpu.matmul %434, %436, %cst_111 {dimension_numbers = #tpu.dot_dimension_numbers<[1], [0], [0], [1], [0, 0, 1, 1], [], []>} : vector<8x10xf32>, vector<10x8xf32>, vector<8x8xf32> -> vector<8x8xf32>
    %438 = arith.addf %380, %437 : vector<8x8xf32>
    %439 = vector.extract_strided_slice %264 {offsets = [24, 0], sizes = [8, 30], strides = [1, 1]} : vector<32x30xf32> to vector<8x30xf32>
    %cst_112 = arith.constant dense<0.000000e+00> : vector<8x30xf32>
    %440 = tpu.matmul %409, %251, %cst_112 {dimension_numbers = #tpu.dot_dimension_numbers<[1], [0], [0], [1], [0, 0, 1, 1], [], []>} : vector<8x10xf32>, vector<10x30xf32>, vector<8x30xf32> -> vector<8x30xf32>
    %441 = arith.addf %440, %255 : vector<8x30xf32>
    %442 = vector.extract_strided_slice %439 {offsets = [0, 0], sizes = [8, 10], strides = [1, 1]} : vector<8x30xf32> to vector<8x10xf32>
    %443 = vector.extract_strided_slice %441 {offsets = [0, 0], sizes = [8, 10], strides = [1, 1]} : vector<8x30xf32> to vector<8x10xf32>
    %444 = arith.addf %442, %443 : vector<8x10xf32>
    %445 = arith.negf %444 : vector<8x10xf32>
    %446 = math.exp %445 : vector<8x10xf32>
    %cst_113 = arith.constant 1.000000e+00 : f32
    %447 = vector.broadcast %cst_113 : f32 to vector<8x10xf32>
    %448 = arith.addf %447, %446 : vector<8x10xf32>
    %449 = arith.divf %447, %448 : vector<8x10xf32>
    %450 = vector.extract_strided_slice %439 {offsets = [0, 10], sizes = [8, 10], strides = [1, 1]} : vector<8x30xf32> to vector<8x10xf32>
    %451 = vector.extract_strided_slice %441 {offsets = [0, 10], sizes = [8, 10], strides = [1, 1]} : vector<8x30xf32> to vector<8x10xf32>
    %452 = arith.addf %450, %451 : vector<8x10xf32>
    %453 = arith.negf %452 : vector<8x10xf32>
    %454 = math.exp %453 : vector<8x10xf32>
    %cst_114 = arith.constant 1.000000e+00 : f32
    %455 = vector.broadcast %cst_114 : f32 to vector<8x10xf32>
    %456 = arith.addf %455, %454 : vector<8x10xf32>
    %457 = arith.divf %455, %456 : vector<8x10xf32>
    %458 = vector.extract_strided_slice %439 {offsets = [0, 20], sizes = [8, 10], strides = [1, 1]} : vector<8x30xf32> to vector<8x10xf32>
    %459 = vector.extract_strided_slice %441 {offsets = [0, 20], sizes = [8, 10], strides = [1, 1]} : vector<8x30xf32> to vector<8x10xf32>
    %460 = arith.mulf %449, %459 : vector<8x10xf32>
    %461 = arith.addf %458, %460 : vector<8x10xf32>
    %462 = math.tanh %461 : vector<8x10xf32>
    %cst_115 = arith.constant 1.000000e+00 : f32
    %463 = vector.broadcast %cst_115 : f32 to vector<8x10xf32>
    %464 = arith.subf %463, %457 : vector<8x10xf32>
    %465 = arith.mulf %464, %462 : vector<8x10xf32>
    %466 = arith.mulf %457, %409 : vector<8x10xf32>
    %467 = arith.addf %465, %466 : vector<8x10xf32>
    %468 = tpu.concatenate %467, %434 in 1 : vector<8x10xf32>, vector<8x10xf32> -> vector<8x20xf32>
    %cst_116 = arith.constant dense<0.000000e+00> : vector<8x40xf32>
    %469 = tpu.matmul %468, %252, %cst_116 {dimension_numbers = #tpu.dot_dimension_numbers<[1], [0], [0], [1], [0, 0, 1, 1], [], []>} : vector<8x20xf32>, vector<20x40xf32>, vector<8x40xf32> -> vector<8x40xf32>
    %470 = arith.addf %469, %258 : vector<8x40xf32>
    %471 = vector.extract_strided_slice %470 {offsets = [0, 0], sizes = [8, 10], strides = [1, 1]} : vector<8x40xf32> to vector<8x10xf32>
    %472 = arith.negf %471 : vector<8x10xf32>
    %473 = math.exp %472 : vector<8x10xf32>
    %cst_117 = arith.constant 1.000000e+00 : f32
    %474 = vector.broadcast %cst_117 : f32 to vector<8x10xf32>
    %475 = arith.addf %474, %473 : vector<8x10xf32>
    %476 = arith.divf %474, %475 : vector<8x10xf32>
    %477 = vector.extract_strided_slice %470 {offsets = [0, 10], sizes = [8, 10], strides = [1, 1]} : vector<8x40xf32> to vector<8x10xf32>
    %478 = arith.negf %477 : vector<8x10xf32>
    %479 = math.exp %478 : vector<8x10xf32>
    %cst_118 = arith.constant 1.000000e+00 : f32
    %480 = vector.broadcast %cst_118 : f32 to vector<8x10xf32>
    %481 = arith.addf %480, %479 : vector<8x10xf32>
    %482 = arith.divf %480, %481 : vector<8x10xf32>
    %483 = vector.extract_strided_slice %470 {offsets = [0, 20], sizes = [8, 10], strides = [1, 1]} : vector<8x40xf32> to vector<8x10xf32>
    %484 = vector.extract_strided_slice %470 {offsets = [0, 30], sizes = [8, 10], strides = [1, 1]} : vector<8x40xf32> to vector<8x10xf32>
    %485 = arith.mulf %476, %484 : vector<8x10xf32>
    %486 = arith.addf %483, %485 : vector<8x10xf32>
    %487 = math.tanh %486 : vector<8x10xf32>
    %cst_119 = arith.constant 1.000000e+00 : f32
    %488 = vector.broadcast %cst_119 : f32 to vector<8x10xf32>
    %489 = arith.subf %488, %482 : vector<8x10xf32>
    %490 = arith.mulf %489, %487 : vector<8x10xf32>
    %491 = arith.mulf %482, %434 : vector<8x10xf32>
    %492 = arith.addf %490, %491 : vector<8x10xf32>
    %c3_120 = arith.constant 3 : index
    %c0_121 = arith.constant 0 : index
    %c0_122 = arith.constant 0 : index
    %493 = vector.load %arg15[%c3_120, %c0_121, %c0_122] : memref<4x10x8xf32, #tpu.memory_space<vmem>>, vector<1x10x8xf32>
    %494 = vector.shape_cast %493 : vector<1x10x8xf32> to vector<10x8xf32>
    %cst_123 = arith.constant dense<0.000000e+00> : vector<8x8xf32>
    %495 = tpu.matmul %492, %494, %cst_123 {dimension_numbers = #tpu.dot_dimension_numbers<[1], [0], [0], [1], [0, 0, 1, 1], [], []>} : vector<8x10xf32>, vector<10x8xf32>, vector<8x8xf32> -> vector<8x8xf32>
    %496 = arith.addf %438, %495 : vector<8x8xf32>
    %c0_124 = arith.constant 0 : index
    %c0_125 = arith.constant 0 : index
    %497 = vector.load %arg16[%c0_124, %c0_125] : memref<1x8xf32, #tpu.memory_space<vmem>>, vector<1x8xf32>
    %498 = vector.broadcast %497 : vector<1x8xf32> to vector<8x8xf32>
    %499 = arith.addf %496, %498 : vector<8x8xf32>
    %c0_126 = arith.constant 0 : index
    %c0_127 = arith.constant 0 : index
    %500 = vector.load %arg17[%c0_126, %c0_127] : memref<8x16xf32, #tpu.memory_space<vmem>>, vector<8x16xf32>
    %cst_128 = arith.constant dense<0.000000e+00> : vector<8x16xf32>
    %501 = tpu.matmul %499, %500, %cst_128 {dimension_numbers = #tpu.dot_dimension_numbers<[1], [0], [0], [1], [0, 0, 1, 1], [], []>} : vector<8x8xf32>, vector<8x16xf32>, vector<8x16xf32> -> vector<8x16xf32>
    %c0_129 = arith.constant 0 : index
    %c0_130 = arith.constant 0 : index
    %502 = vector.load %arg18[%c0_129, %c0_130] : memref<1x16xf32, #tpu.memory_space<vmem>>, vector<1x16xf32>
    %503 = vector.broadcast %502 : vector<1x16xf32> to vector<8x16xf32>
    %504 = arith.addf %501, %503 : vector<8x16xf32>
    %c0_131 = arith.constant 0 : index
    %c0_132 = arith.constant 0 : index
    %505 = vector.load %arg19[%c0_131, %c0_132] : memref<8x16xf32, #tpu.memory_space<vmem>>, vector<8x16xf32>
    tpu.vector_store %arg19[%c0_131, %c0_132], %504 {strides = array<i32>} : memref<8x16xf32, #tpu.memory_space<vmem>>, vector<8x16xf32>,
    return
  }
}

</mosaic_0001>

<bundles_post_ra>
// kernel: tpu_custom_call.1
= control target key start
LH: loop header
LB: loop body
LE: loop exit
PB: predicated region body
PF: predicated region fallthrough
CT: control target
= control target key end

     0   :  { %s4007_s0 = inlined_call_operand.vmem [shape: f32[32,6], index: 0, kind: input, shape index: {}]   ;;  %s4008_s1 = inlined_call_operand.vmem [shape: f32[6,60], index: 1, kind: input, shape index: {}]   ;;  %s4009_s2 = inlined_call_operand.vmem [shape: f32[1,60], index: 2, kind: input, shape index: {}]   ;;  %s4010_s3 = inlined_call_operand.vmem [shape: f32[20,60], index: 3, kind: input, shape index: {}]   ;;  %s4011_s4 = inlined_call_operand.vmem [shape: f32[1,60], index: 4, kind: input, shape index: {}]   ;;  %s4012_s5 = inlined_call_operand.vmem [shape: f32[40,80], index: 5, kind: input, shape index: {}]   ;;  %s4013_s6 = inlined_call_operand.vmem [shape: f32[1,80], index: 6, kind: input, shape index: {}]   ;;  %s4014_s7 = inlined_call_operand.vmem [shape: f32[4,20,8], index: 7, kind: input, shape index: {}]   ;;  %s4015_s8 = inlined_call_operand.vmem [shape: f32[32,2], index: 8, kind: input, shape index: {}]   ;;  %s4016_s9 = inlined_call_operand.vmem [shape: f32[2,30], index: 9, kind: input, shape index: {}]   ;;  %s4017_s10 = inlined_call_operand.vmem [shape: f32[1,30], index: 10, kind: input, shape index: {}]   ;;  %s4018_s11 = inlined_call_operand.vmem [shape: f32[10,30], index: 11, kind: input, shape index: {}]   ;;  %s4019_s12 = inlined_call_operand.vmem [shape: f32[1,30], index: 12, kind: input, shape index: {}]   ;;  %s4020_s13 = inlined_call_operand.vmem [shape: f32[20,40], index: 13, kind: input, shape index: {}]   ;;  %s4021_s14 = inlined_call_operand.vmem [shape: f32[1,40], index: 14, kind: input, shape index: {}]   ;;  %s4022_s15 = inlined_call_operand.vmem [shape: f32[4,10,8], index: 15, kind: input, shape index: {}]   ;;  %s4023_s16 = inlined_call_operand.vmem [shape: f32[1,8], index: 16, kind: input, shape index: {}]   ;;  %s4024_s17 = inlined_call_operand.vmem [shape: f32[8,16], index: 17, kind: input, shape index: {}]   ;;  %s4025_s18 = inlined_call_operand.vmem [shape: f32[1,16], index: 18, kind: input, shape index: {}]   ;;  %s4026_s19 = inlined_call_operand.hbm [shape: f32[8,16], index: 19, kind: output, shape index: {}]  }
   0x1   :  { %4029 = sst [smem:[#allocation5_spill]] %s4007_s0 }
   0x2   :  { %4030 = sst [smem:[#allocation6_spill]] %s4008_s1 }
   0x3   :  { %4031 = sst [smem:[#allocation7_spill]] %s4009_s2 }
   0x4   :  { %4032 = sst [smem:[#allocation8_spill]] %s4010_s3 }
   0x5   :  { %s4033_s20 = sld [smem:[#allocation8_spill]]  ;;  %vm203_vm0 = vcmask 1043456   ;;  %v3288_v2 = vmov 0.0   ;;  %vm110_vm1 = vcmask 1045504   ;;  %vm97_vm2 = vcmask 48128  }
   0x6   :  { %s4034_s22 = sld [smem:[#allocation6_spill]]  ;;  %2931 = vmatprep.subr.mxu1 %v3288_v2 }
   0x7   :  { %s4035_s24 = sld [smem:[#allocation5_spill]] }
   0xb   :  { %v3401_v0 = vld [vmem:[%s4033_s20 + $0x10] sm:$0xf]  ;;  %v3413_v4 = vld [vmem:[%s4033_s20 + $0x8] sm:$0xff] }
   0xc   :  { %v89_v1 = vld [vmem:[%s4034_s22] sm:$0x3f]  ;;  %2932 = vmatpush3.msk.msra.mxu1 %vm203_vm0, %v3401_v0 }
   0xd   :  { %v85_v3 = vld [vmem:[%s4035_s24] sm:$0xff]  ;;  %2923 = vmatprep.subr.msk.mxu0 %vm110_vm1, %v89_v1  ;;  %v86_v5 = vld [vmem:[%s4035_s24 + $0x8] sm:$0xff] }
   0xe   :  { %24 = vsyncpa [#allocation3], 0  ;;  %2933 = vmatprep.subr.mxu1 %v3288_v2  ;;  %2924 = vmatpush3.msk.msra.mxu0 %vm110_vm1, %v89_v1  ;;  %v3424_v6 = vld [vmem:[%s4033_s20] sm:$0xff]  ;;  %vm3289_vm3 = vmmov 0   ;;  %s3290_s20 = smov 88   ;;  %s4036_s22 = sld [smem:[#allocation7_spill]] }
   0xf   :  { %2925 = vmatprep.mubr.msk.f32.mxu0 %vm97_vm2, %v85_v3  ;;  %2934 = vmatpush3.msra.mxu1 %v3413_v4  ;;  %v3448_v7 = vld [vmem:[%s4011_s4] ss:$0 sm:$0xff]  ;;  %s3291_s4 = smov 40   ;;  %v3469_v25 = vld [vmem:[%s4012_s5 + $0x18] sm:$0xff]  ;;  %v87_v26 = vld [vmem:[%s4035_s24 + $0x10] sm:$0xff]  ;;  %vm199_vm4 = vcmask 162816  }
  0x10   :  { %2926 = vmatmul.mubr.msk.f32.vlgmr.msra.gmra.mxu0 %vm97_vm2, %v86_v5  ;;  %2935 = vmatprep.subr.mxu1 %v3288_v2  ;;  %v3464_v24 = vld [vmem:[%s4012_s5 + $0x20] sm:$0xff]  ;;  %v88_v27 = vld [vmem:[%s4035_s24 + $0x18] sm:$0xff]  ;;  %v3483_v28 = vld [vmem:[%s4012_s5 + $0x10] sm:$0xff]  ;;  %s3292_s24 = smov 108   ;;  %vm308_vm5 = vcmask 326656   ;;  %s3293_s25 = smov 68  }
  0x11   :  { %2936 = vmatpush3.msra.mxu1 %v3424_v6  ;;  %2937 = vmatprep.mubr.msk.f32.mxu1 %vm3289_vm3, %v3288_v2  ;;  %v3493_v29 = vld [vmem:[%s4012_s5 + $0x8] sm:$0xff]  ;;  %v3503_v31 = vld [vmem:[%s4012_s5] sm:$0xff]  ;;  %vm1383_vm6 = vcmask 1041408   ;;  %vm1370_vm7 = vcmask 15360   ;;  %vm1472_vm8 = vcmask 80896   ;;  %s3296_s21 = smov 98  }
  0x12   :  { %2938 = vmatmul.mubr.f32.vlgmr.msra.gmra.mxu1 %v3288_v2  ;;  %2940 = vmatprep.subr.mxu0 %v3288_v2  ;;  %v3535_v41 = vld [vmem:[%s4013_s6] ss:$0 sm:$0xff]  ;;  %vm2632_vm9 = vcmask 64512   ;;  %vm2706_vm10 = vcmask 130048  }
  0x13   :  { %2953 = vmatprep.subr.mxu1 %v3288_v2  ;;  %2959 = vmatprep.mubr.msk.f32.mxu1 %vm3289_vm3, %v3288_v2 }
  0x14   :  { %2954 = vmatpush3.msk.msra.mxu1 %vm203_vm0, %v3401_v0  ;;  %v3457_v12 = vld [vmem:[%s4036_s22] ss:$0 sm:$0xff]  ;;  %2941 = vmatpush3.msra.mxu0 %v3464_v24 }
  0x15   :  { %2955 = vmatprep.subr.mxu1 %v3288_v2  ;;  %2928 = vmatprep.mubr.msk.f32.mxu0 %vm97_vm2, %v87_v26 }
  0x16   :  { %2956 = vmatpush3.msra.mxu1 %v3413_v4  ;;  %2942 = vmatprep.subr.mxu0 %v3288_v2 }
  0x17   :  { %2957 = vmatprep.subr.mxu1 %v3288_v2  ;;  %2929 = vmatmul.mubr.msk.f32.gmra.mxu0 %vm97_vm2, %v88_v27 }
  0x18   :  { %2958 = vmatpush3.msra.mxu1 %v3424_v6  ;;  %2943 = vmatpush3.msra.mxu0 %v3469_v25 }
  0x19   :  { %2975 = vmatprep.subr.mxu1 %v3288_v2  ;;  %2950 = vmatprep.mubr.msk.f32.mxu0 %vm3289_vm3, %v3288_v2 }
  0x1a   :  { %2944 = vmatprep.subr.mxu0 %v3288_v2 }
  0x1b   :  { %2945 = vmatpush3.msra.mxu0 %v3483_v28 }
  0x1c   :  { %2946 = vmatprep.subr.mxu0 %v3288_v2 }
  0x1d   :  { %2947 = vmatpush3.msra.mxu0 %v3493_v29 }
  0x1e   :  { %2948 = vmatprep.subr.mxu0 %v3288_v2 }
  0x1f   :  { %2949 = vmatpush3.msra.mxu0 %v3503_v31 }
  0x20   :  { %2962 = vmatprep.subr.mxu0 %v3288_v2 }
  0xd0   :  { %v3452_v11 = vpop.f32.mrf.mxu0 }
  0xd1   :  { %v186_v48 = vadd.f32 %v3452_v11, %v3457_v12 }
  0xd2   :  { %v273_v8 = vpop.f32.mrf.mxu1  ;;  %v180_v13 = vpop.f32.mrf.mxu0 }
  0xd3   :  { %v274_v9 = vadd.f32 %v3448_v7, %v273_v8  ;;  %v181_v14 = vadd.f32 %v3457_v12, %v180_v13 }
  0xd4   :  { %v2939_v10 = vpop.f32.mrf.mxu1 }
  0xd5   :  { %285 = vrot.lane.b32.xlu0 %v274_v9, %s3290_s20  ;;  %v277_v15 = vadd.f32 %v274_v9, %v181_v14 }
  0xd7   :  { %v2731_v16 = vmul.f32 -1.442695, %v277_v15  ;;  %v3528_v39 = vpop.f32.mrf.mxu0 }
  0xd9   :  { %3170 = vpow2.f32 %v2731_v16  ;;  %v3530_v40 = vpop.f32.mrf.mxu0 }
  0xe6   :  { %v3171_v17 = vpop.eup %3170 }
  0xe7   :  { %v281_v18 = vadd.f32 1.0, %v3171_v17 }
  0xe9   :  { %3172 = vrcp.f32 %v281_v18 }
  0xf6   :  { %v3173_v19 = vpop.eup %3172 }
  0xf7   :  { %v295_v32 = vsub.f32 1.0, %v3173_v19  ;;  %v301_v34 = vmul.f32 0.0, %v3173_v19 }
 0x147   :  { %v286_v20 = vpop.permute.xlu0 %285 }
 0x148   :  { %v288_v21 = vmul.f32 %v3173_v19, %v286_v20 }
 0x14a   :  { %290 = vrot.lane.b32.xlu0 %v288_v21, %s3291_s4 }
 0x1bc   :  { %v291_v22 = vpop.permute.xlu0 %290 }
 0x1bd   :  { %v293_v23 = vadd.f32 %v291_v22, %v181_v14 }
 0x1bf   :  { %3174 = vtanh.f32 %v293_v23 }
 0x1cc   :  { %v3175_v30 = vpop.eup %3174 }
 0x1cd   :  { %297 = vrot.lane.b32.xlu1 %v3175_v30, %s3292_s24 }
 0x23f   :  { %v298_v33 = vpop.permute.xlu1 %297 }
 0x240   :  { %v300_v35 = vmul.f32 %v298_v33, %v295_v32  ;;  %v191_v33 = vadd.f32 %v3457_v12, %v3530_v40 }
 0x242   :  { %v3507_v36 = vadd.f32 %v301_v34, %v300_v35 }
 0x244   :  { %304 = vrot.lane.b32.xlu1 %v3507_v36, %s3292_s24 }
 0x2b6   :  { %v305_v37 = vpop.permute.xlu1 %304 }
 0x2b7   :  { %v307_v38 = vsel %vm199_vm4, %v305_v37, 0.0  ;;  %2960 = vmatmul.mubr.msk.f32.vlgmr.msra.gmra.mxu1 %vm199_vm4, %v305_v37 }
 0x2b8   :  { %2951 = vmatmul.mubr.msk.f32.vlgmr.msra.gmra.mxu0 %vm308_vm5, %v307_v38  ;;  %2981 = vmatprep.mubr.msk.f32.mxu1 %vm3289_vm3, %v3288_v2 }
 0x2b9   :  { %2963 = vmatpush3.msra.mxu0 %v3464_v24  ;;  %2972 = vmatprep.mubr.msk.f32.mxu0 %vm3289_vm3, %v3288_v2 }
 0x2ba   :  { %2964 = vmatprep.subr.mxu0 %v3288_v2 }
 0x2bb   :  { %2965 = vmatpush3.msra.mxu0 %v3469_v25 }
 0x2bc   :  { %2966 = vmatprep.subr.mxu0 %v3288_v2 }
 0x2bd   :  { %2967 = vmatpush3.msra.mxu0 %v3483_v28 }
 0x2be   :  { %2968 = vmatprep.subr.mxu0 %v3288_v2 }
 0x2bf   :  { %2969 = vmatpush3.msra.mxu0 %v3493_v29 }
 0x2c0   :  { %2970 = vmatprep.subr.mxu0 %v3288_v2 }
 0x2c1   :  { %2971 = vmatpush3.msra.mxu0 %v3503_v31 }
 0x2c2   :  { %2993 = vmatprep.subr.mxu0 %v3288_v2 }
 0x377   :  { %v478_v42 = vpop.f32.mrf.mxu1 }
 0x378   :  { %v479_v43 = vadd.f32 %v3448_v7, %v478_v42  ;;  %v378_v44 = vpop.f32.mrf.mxu0 }
 0x379   :  { %v379_v45 = vadd.f32 %v3535_v41, %v378_v44  ;;  %v2961_v46 = vpop.f32.mrf.mxu1 }
 0x37a   :  { %v2952_v47 = vpop.f32.mrf.mxu0  ;;  %490 = vrot.lane.b32.xlu0 %v479_v43, %s3290_s20  ;;  %v482_v49 = vadd.f32 %v479_v43, %v186_v48 }
 0x37b   :  { %389 = vrot.lane.b32.xlu1 %v379_v45, %s3293_s25  ;;  %v2733_v51 = vmul.f32 -1.442695, %v379_v45 }
 0x37c   :  { %v2736_v50 = vmul.f32 -1.442695, %v482_v49 }
 0x37e   :  { %3176 = vpow2.f32 %v2736_v50 }
 0x37f   :  { %3178 = vpow2.f32 %v2733_v51 }
 0x38b   :  { %v3177_v52 = vpop.eup %3176 }
 0x38c   :  { %v3179_v53 = vpop.eup %3178  ;;  %v486_v54 = vadd.f32 1.0, %v3177_v52 }
 0x38d   :  { %v385_v55 = vadd.f32 1.0, %v3179_v53  ;;  %v2741_v53 = vld [vmem:[%s4014_s7 + $0x28] sm:$0xf] }
 0x38e   :  { %3180 = vrcp.f32 %v486_v54  ;;  %v2740_v54 = vld [vmem:[%s4014_s7 + $0x20] sm:$0xff]  ;;  %2976 = vmatpush3.msk.msra.mxu1 %vm203_vm0, %v2741_v53 }
 0x38f   :  { %3182 = vrcp.f32 %v385_v55  ;;  %2977 = vmatprep.subr.mxu1 %v3288_v2 }
 0x390   :  { %2978 = vmatpush3.msra.mxu1 %v2740_v54 }
 0x391   :  { %2979 = vmatprep.subr.mxu1 %v3288_v2 }
 0x39b   :  { %v3181_v56 = vpop.eup %3180 }
 0x39c   :  { %v3183_v58 = vpop.eup %3182  ;;  %v500_v9 = vsub.f32 1.0, %v3181_v56  ;;  %v506_v11 = vmul.f32 %v3181_v56, %v3507_v36 }
 0x39d   :  { %v399_v16 = vsub.f32 1.0, %v3183_v58  ;;  %v405_v18 = vmul.f32 0.0, %v3183_v58 }
 0x3ec   :  { %v491_v57 = vpop.permute.xlu0 %490 }
 0x3ed   :  { %v493_v59 = vmul.f32 %v3181_v56, %v491_v57  ;;  %v390_v60 = vpop.permute.xlu1 %389  ;;  %v2739_v56 = vld [vmem:[%s4014_s7 + $0x18] sm:$0xff] }
 0x3ee   :  { %v392_v61 = vmul.f32 %v3183_v58, %v390_v60  ;;  %2980 = vmatpush3.msra.mxu1 %v2739_v56 }
 0x3ef   :  { %495 = vrot.lane.b32.xlu0 %v493_v59, %s3291_s4  ;;  %2984 = vmatprep.subr.mxu1 %v3288_v2 }
 0x3f0   :  { %394 = vrot.lane.b32.xlu1 %v392_v61, %s3291_s4 }
 0x461   :  { %v496_v62 = vpop.permute.xlu0 %495 }
 0x462   :  { %v498_v63 = vadd.f32 %v496_v62, %v186_v48  ;;  %v395_v1 = vpop.permute.xlu1 %394 }
 0x463   :  { %v397_v3 = vadd.f32 %v395_v1, %v379_v45 }
 0x464   :  { %3184 = vtanh.f32 %v498_v63 }
 0x465   :  { %3186 = vtanh.f32 %v397_v3 }
 0x471   :  { %v3185_v5 = vpop.eup %3184 }
 0x472   :  { %v3187_v8 = vpop.eup %3186  ;;  %502 = vrot.lane.b32.xlu0 %v3185_v5, %s3292_s24 }
 0x473   :  { %401 = vrot.lane.b32.xlu1 %v3187_v8, %s3292_s24 }
 0x4e4   :  { %v503_v10 = vpop.permute.xlu0 %502 }
 0x4e5   :  { %v505_v13 = vmul.f32 %v503_v10, %v500_v9  ;;  %v402_v15 = vpop.permute.xlu1 %401  ;;  %v409_v9 = vld [vmem:[%s4014_s7 + $0x10] sm:$0xf] }
 0x4e6   :  { %v404_v17 = vmul.f32 %v402_v15, %v399_v16 }
 0x4e7   :  { %v3548_v14 = vadd.f32 %v506_v11, %v505_v13  ;;  %v408_v11 = vld [vmem:[%s4014_s7 + $0x8] sm:$0xff]  ;;  %v407_v13 = vld [vmem:[%s4014_s7] sm:$0xff] }
 0x4e8   :  { %v3552_v19 = vadd.f32 %v405_v18, %v404_v17 }
 0x4e9   :  { %509 = vrot.lane.b32.xlu0 %v3548_v14, %s3292_s24 }
 0x55b   :  { %v510_v20 = vpop.permute.xlu0 %509 }
 0x55c   :  { %v512_v21 = vsel %vm199_vm4, %v510_v20, %v3552_v19 }
 0x55d   :  { %2973 = vmatmul.mubr.msk.f32.vlgmr.msra.gmra.mxu0 %vm308_vm5, %v512_v21 }
 0x55e   :  { %2994 = vmatpush3.msk.msra.mxu0 %vm203_vm0, %v3401_v0  ;;  %2999 = vmatprep.mubr.msk.f32.mxu0 %vm3289_vm3, %v3288_v2 }
 0x55f   :  { %2995 = vmatprep.subr.mxu0 %v3288_v2 }
 0x560   :  { %2996 = vmatpush3.msra.mxu0 %v3413_v4 }
 0x561   :  { %2997 = vmatprep.subr.mxu0 %v3288_v2 }
 0x562   :  { %2998 = vmatpush3.msra.mxu0 %v3424_v6 }
 0x563   :  { %3000 = vmatmul.mubr.msk.f32.vlgmr.msra.gmra.mxu0 %vm199_vm4, %v510_v20  ;;  %3015 = vmatprep.subr.mxu0 %v3288_v2 }
 0x564   :  { %3021 = vmatprep.mubr.msk.f32.mxu0 %vm3289_vm3, %v3288_v2 }
 0x61d   :  { %v582_v22 = vpop.f32.mrf.mxu0 }
 0x61e   :  { %v583_v23 = vadd.f32 %v3535_v41, %v582_v22 }
 0x61f   :  { %v2974_v26 = vpop.f32.mrf.mxu0 }
 0x620   :  { %593 = vrot.lane.b32.xlu1 %v583_v23, %s3293_s25  ;;  %v2738_v34 = vmul.f32 -1.442695, %v583_v23 }
 0x622   :  { %3188 = vpow2.f32 %v2738_v34  ;;  %v2752_v34 = vld [vmem:[%s4014_s7 + $0x38] sm:$0xff] }
 0x623   :  { %v839_v27 = vpop.f32.mrf.mxu0 }
 0x624   :  { %v840_v30 = vadd.f32 %v3448_v7, %v839_v27 }
 0x625   :  { %v3001_v32 = vpop.f32.mrf.mxu0 }
 0x626   :  { %851 = vrot.lane.b32.xlu0 %v840_v30, %s3290_s20  ;;  %v843_v35 = vadd.f32 %v840_v30, %v191_v33 }
 0x628   :  { %v2748_v36 = vmul.f32 -1.442695, %v843_v35  ;;  %v2751_v35 = vld [vmem:[%s4014_s7 + $0x30] sm:$0xff] }
 0x62a   :  { %3190 = vpow2.f32 %v2748_v36 }
 0x62f   :  { %v3189_v37 = vpop.eup %3188 }
 0x630   :  { %v589_v38 = vadd.f32 1.0, %v3189_v37 }
 0x632   :  { %3192 = vrcp.f32 %v589_v38 }
 0x637   :  { %v3191_v42 = vpop.eup %3190 }
 0x638   :  { %v847_v43 = vadd.f32 1.0, %v3191_v42 }
 0x63a   :  { %3194 = vrcp.f32 %v847_v43 }
 0x63f   :  { %v3193_v44 = vpop.eup %3192 }
 0x640   :  { %v603_v58 = vsub.f32 1.0, %v3193_v44  ;;  %v609_v60 = vmul.f32 %v3193_v44, %v3552_v19 }
 0x647   :  { %v3195_v47 = vpop.eup %3194 }
 0x648   :  { %v861_v63 = vsub.f32 1.0, %v3195_v47  ;;  %v867_v3 = vmul.f32 %v3195_v47, %v3548_v14 }
 0x692   :  { %v594_v45 = vpop.permute.xlu1 %593 }
 0x693   :  { %v596_v46 = vmul.f32 %v3193_v44, %v594_v45 }
 0x695   :  { %598 = vrot.lane.b32.xlu1 %v596_v46, %s3291_s4 }
 0x698   :  { %v852_v48 = vpop.permute.xlu0 %851 }
 0x699   :  { %v854_v49 = vmul.f32 %v3195_v47, %v852_v48 }
 0x69b   :  { %856 = vrot.lane.b32.xlu0 %v854_v49, %s3291_s4 }
 0x707   :  { %v599_v40 = vpop.permute.xlu1 %598 }
 0x708   :  { %v601_v50 = vadd.f32 %v599_v40, %v583_v23 }
 0x70a   :  { %3196 = vtanh.f32 %v601_v50 }
 0x70d   :  { %v857_v51 = vpop.permute.xlu0 %856 }
 0x70e   :  { %v859_v52 = vadd.f32 %v857_v51, %v191_v33  ;;  %v2753_v33 = vld [vmem:[%s4014_s7 + $0x40] sm:$0xf] }
 0x70f   :  { %3016 = vmatpush3.msk.msra.mxu0 %vm203_vm0, %v2753_v33  ;;  %v3762_v33 = vld [vmem:[%s4019_s12] ss:$0 sm:$0xff]  ;;  %s3294_s12 = smov 20  }
 0x710   :  { %3198 = vtanh.f32 %v859_v52  ;;  %3017 = vmatprep.subr.mxu0 %v3288_v2 }
 0x711   :  { %3018 = vmatpush3.msra.mxu0 %v2752_v34 }
 0x712   :  { %3019 = vmatprep.subr.mxu0 %v3288_v2 }
 0x713   :  { %3020 = vmatpush3.msra.mxu0 %v2751_v35 }
 0x714   :  { %3024 = vmatprep.subr.mxu0 %v3288_v2 }
 0x717   :  { %v3197_v55 = vpop.eup %3196 }
 0x718   :  { %605 = vrot.lane.b32.xlu1 %v3197_v55, %s3292_s24 }
 0x71d   :  { %v3199_v57 = vpop.eup %3198 }
 0x71e   :  { %863 = vrot.lane.b32.xlu0 %v3199_v57, %s3292_s24 }
 0x722   :  { %694 = vrot.lane.b32.xlu0 %v3552_v19, %s3292_s24 }
 0x78a   :  { %v606_v59 = vpop.permute.xlu1 %605 }
 0x78b   :  { %v608_v61 = vmul.f32 %v606_v59, %v603_v58 }
 0x78d   :  { %v3595_v62 = vadd.f32 %v609_v60, %v608_v61 }
 0x78f   :  { %616 = vrot.lane.b32.xlu1 %v3595_v62, %s3292_s24 }
 0x790   :  { %v864_v1 = vpop.permute.xlu0 %863 }
 0x791   :  { %v866_v5 = vmul.f32 %v864_v1, %v861_v63 }
 0x793   :  { %v3600_v8 = vadd.f32 %v867_v3, %v866_v5 }
 0x794   :  { %v695_v14 = vpop.permute.xlu0 %694 }
 0x795   :  { %870 = vrot.lane.b32.xlu1 %v3600_v8, %s3292_s24 }
 0x801   :  { %v617_v10 = vpop.permute.xlu1 %616 }
 0x802   :  { %2982 = vmatmul.mubr.msk.f32.vlgmr.msra.gmra.mxu1 %vm199_vm4, %v617_v10 }
 0x803   :  { %2985 = vmatpush3.msk.msra.mxu1 %vm203_vm0, %v409_v9  ;;  %2990 = vmatprep.mubr.msk.f32.mxu1 %vm3289_vm3, %v3288_v2 }
 0x804   :  { %2986 = vmatprep.subr.mxu1 %v3288_v2 }
 0x805   :  { %2987 = vmatpush3.msra.mxu1 %v408_v11 }
 0x806   :  { %2988 = vmatprep.subr.mxu1 %v3288_v2 }
 0x807   :  { %2989 = vmatpush3.msra.mxu1 %v407_v13  ;;  %v3628_v15 = vpop.permute.xlu1 %870 }
 0x808   :  { %2991 = vmatmul.mubr.msk.f32.vlgmr.msra.gmra.mxu1 %vm199_vm4, %v695_v14  ;;  %3002 = vmatprep.subr.mxu1 %v3288_v2  ;;  %v873_v16 = vsel %vm199_vm4, %v3628_v15, %v3595_v62 }
 0x809   :  { %3003 = vmatpush3.msra.mxu1 %v3464_v24  ;;  %3012 = vmatprep.mubr.msk.f32.mxu1 %vm3289_vm3, %v3288_v2 }
 0x80a   :  { %3004 = vmatprep.subr.mxu1 %v3288_v2 }
 0x80b   :  { %3005 = vmatpush3.msra.mxu1 %v3469_v25 }
 0x80c   :  { %3006 = vmatprep.subr.mxu1 %v3288_v2 }
 0x80d   :  { %3007 = vmatpush3.msra.mxu1 %v3483_v28 }
 0x80e   :  { %3008 = vmatprep.subr.mxu1 %v3288_v2 }
 0x80f   :  { %3009 = vmatpush3.msra.mxu1 %v3493_v29 }
 0x810   :  { %3010 = vmatprep.subr.mxu1 %v3288_v2 }
 0x811   :  { %3011 = vmatpush3.msra.mxu1 %v3503_v31 }
 0x812   :  { %3013 = vmatmul.mubr.msk.f32.vlgmr.msra.gmra.mxu1 %vm308_vm5, %v873_v16  ;;  %3033 = vmatprep.subr.mxu1 %v3288_v2  ;;  %v2762_v16 = vld [vmem:[%s4014_s7 + $0x50] sm:$0xff] }
 0x813   :  { %3034 = vmatpush3.msra.mxu1 %v3464_v24  ;;  %3043 = vmatprep.mubr.msk.f32.mxu1 %vm3289_vm3, %v3288_v2 }
 0x814   :  { %3035 = vmatprep.subr.mxu1 %v3288_v2 }
 0x815   :  { %3036 = vmatpush3.msra.mxu1 %v3469_v25 }
 0x816   :  { %3037 = vmatprep.subr.mxu1 %v3288_v2 }
 0x817   :  { %3038 = vmatpush3.msra.mxu1 %v3483_v28 }
 0x818   :  { %3039 = vmatprep.subr.mxu1 %v3288_v2 }
 0x819   :  { %3040 = vmatpush3.msra.mxu1 %v3493_v29 }
 0x81a   :  { %3041 = vmatprep.subr.mxu1 %v3288_v2 }
 0x81b   :  { %3042 = vmatpush3.msra.mxu1 %v3503_v31 }
 0x8c2   :  { %v689_v24 = vpop.f32.mrf.mxu1 }
 0x8c4   :  { %v2983_v17 = vpop.f32.mrf.mxu1 }
 0x8c8   :  { %v767_v18 = vpop.f32.mrf.mxu1 }
 0x8c9   :  { %v768_v19 = vadd.f32 %v767_v18, %v689_v24  ;;  %v2761_v24 = vld [vmem:[%s4014_s7 + $0x48] sm:$0xff]  ;;  %v1362_v18 = vld [vmem:[%s4016_s9] sm:$0x3] }
 0x8ca   :  { %v2992_v20 = vpop.f32.mrf.mxu1  ;;  %3055 = vmatprep.subr.msk.mxu1 %vm1383_vm6, %v1362_v18 }
 0x8cb   :  { %v1359_v20 = vld [vmem:[%s4015_s8 + $0x8] sm:$0xff] }
 0x8d2   :  { %v943_v21 = vpop.f32.mrf.mxu1 }
 0x8d3   :  { %v944_v25 = vadd.f32 %v3535_v41, %v943_v21 }
 0x8d4   :  { %v3014_v22 = vpop.f32.mrf.mxu1 }
 0x8d5   :  { %954 = vrot.lane.b32.xlu0 %v944_v25, %s3293_s25  ;;  %v2750_v28 = vmul.f32 -1.442695, %v944_v25 }
 0x8d7   :  { %3200 = vpow2.f32 %v2750_v28 }
 0x8e4   :  { %v3201_v23 = vpop.eup %3200 }
 0x8e5   :  { %v950_v26 = vadd.f32 1.0, %v3201_v23 }
 0x8e7   :  { %3202 = vrcp.f32 %v950_v26  ;;  %v3738_v26 = vld [vmem:[%s4018_s11 + $0x8] sm:$0x3] }
 0x8f4   :  { %v3203_v29 = vpop.eup %3202 }
 0x8f5   :  { %v964_v37 = vsub.f32 1.0, %v3203_v29  ;;  %v970_v42 = vmul.f32 %v3203_v29, %v3595_v62 }
 0x947   :  { %v955_v27 = vpop.permute.xlu0 %954 }
 0x948   :  { %v957_v30 = vmul.f32 %v3203_v29, %v955_v27  ;;  %v3744_v27 = vld [vmem:[%s4018_s11] sm:$0xff] }
 0x94a   :  { %959 = vrot.lane.b32.xlu1 %v957_v30, %s3291_s4 }
 0x9bc   :  { %v960_v31 = vpop.permute.xlu1 %959 }
 0x9bd   :  { %v962_v32 = vadd.f32 %v960_v31, %v944_v25 }
 0x9bf   :  { %3204 = vtanh.f32 %v962_v32 }
 0x9cc   :  { %v3205_v36 = vpop.eup %3204 }
 0x9cd   :  { %966 = vrot.lane.b32.xlu0 %v3205_v36, %s3292_s24 }
 0xa3f   :  { %v967_v38 = vpop.permute.xlu0 %966 }
 0xa40   :  { %v969_v43 = vmul.f32 %v967_v38, %v964_v37  ;;  %v3769_v38 = vld [vmem:[%s4017_s10] ss:$0 sm:$0xff] }
 0xa42   :  { %v3668_v44 = vadd.f32 %v970_v42, %v969_v43 }
 0xa44   :  { %977 = vrot.lane.b32.xlu1 %v3668_v44, %s3292_s24 }
 0xab6   :  { %v978_v45 = vpop.permute.xlu1 %977 }
 0xab7   :  { %3022 = vmatmul.mubr.msk.f32.vlgmr.msra.gmra.mxu0 %vm199_vm4, %v978_v45 }
 0xab8   :  { %3025 = vmatpush3.msk.msra.mxu0 %vm203_vm0, %v3401_v0  ;;  %3030 = vmatprep.mubr.msk.f32.mxu0 %vm3289_vm3, %v3288_v2 }
 0xab9   :  { %3026 = vmatprep.subr.mxu0 %v3288_v2 }
 0xaba   :  { %3027 = vmatpush3.msra.mxu0 %v3413_v4 }
 0xabb   :  { %3028 = vmatprep.subr.mxu0 %v3288_v2 }
 0xabc   :  { %3029 = vmatpush3.msra.mxu0 %v3424_v6  ;;  %v196_v6 = vadd.f32 %v3528_v39, %v3457_v12 }
 0xabd   :  { %3031 = vmatmul.mubr.msk.f32.vlgmr.msra.gmra.mxu0 %vm199_vm4, %v3628_v15  ;;  %3046 = vmatprep.subr.mxu0 %v3288_v2 }
 0xabe   :  { %3052 = vmatprep.mubr.msk.f32.mxu0 %vm3289_vm3, %v3288_v2 }
 0xb77   :  { %v1050_v0 = vpop.f32.mrf.mxu0 }
 0xb78   :  { %v3686_v46 = vadd.f32 %v1050_v0, %v768_v19  ;;  %v1358_v19 = vld [vmem:[%s4015_s8] sm:$0xff] }
 0xb79   :  { %v3023_v47 = vpop.f32.mrf.mxu0 }
 0xb7d   :  { %v1123_v48 = vpop.f32.mrf.mxu0 }
 0xb7e   :  { %v1124_v49 = vadd.f32 %v3448_v7, %v1123_v48 }
 0xb7f   :  { %v3032_v4 = vpop.f32.mrf.mxu0 }
 0xb80   :  { %1135 = vrot.lane.b32.xlu0 %v1124_v49, %s3290_s20  ;;  %v1127_v40 = vadd.f32 %v1124_v49, %v196_v6  ;;  %s3295_s20 = smov 118  }
 0xb82   :  { %v2758_v50 = vmul.f32 -1.442695, %v1127_v40  ;;  %v3779_v40 = vld [vmem:[%s4020_s13 + $0x10] sm:$0xf] }
 0xb84   :  { %3206 = vpow2.f32 %v2758_v50  ;;  %v3784_v50 = vld [vmem:[%s4020_s13 + $0x8] sm:$0xff] }
 0xb91   :  { %v3207_v51 = vpop.eup %3206 }
 0xb92   :  { %v1131_v52 = vadd.f32 1.0, %v3207_v51 }
 0xb94   :  { %3208 = vrcp.f32 %v1131_v52  ;;  %v3795_v52 = vld [vmem:[%s4020_s13] sm:$0xff] }
 0xba1   :  { %v3209_v53 = vpop.eup %3208 }
 0xba2   :  { %v1145_v58 = vsub.f32 1.0, %v3209_v53  ;;  %v1151_v12 = vmul.f32 %v3209_v53, %v3600_v8 }
 0xbf2   :  { %v1136_v54 = vpop.permute.xlu0 %1135 }
 0xbf3   :  { %v1138_v55 = vmul.f32 %v3209_v53, %v1136_v54 }
 0xbf5   :  { %1140 = vrot.lane.b32.xlu1 %v1138_v55, %s3291_s4 }
 0xc67   :  { %v1141_v56 = vpop.permute.xlu1 %1140 }
 0xc68   :  { %v1143_v57 = vadd.f32 %v1141_v56, %v196_v6 }
 0xc6a   :  { %3210 = vtanh.f32 %v1143_v57 }
 0xc77   :  { %v3211_v7 = vpop.eup %3210 }
 0xc78   :  { %1147 = vrot.lane.b32.xlu0 %v3211_v7, %s3292_s24 }
 0xcea   :  { %v1148_v59 = vpop.permute.xlu0 %1147 }
 0xceb   :  { %v1150_v39 = vmul.f32 %v1148_v59, %v1145_v58 }
 0xced   :  { %v3695_v60 = vadd.f32 %v1151_v12, %v1150_v39  ;;  %v3821_v39 = vld [vmem:[%s4021_s14] ss:$0 sm:$0xff] }
 0xcef   :  { %1154 = vrot.lane.b32.xlu1 %v3695_v60, %s3292_s24 }
 0xd61   :  { %v1155_v61 = vpop.permute.xlu1 %1154 }
 0xd62   :  { %v1157_v62 = vsel %vm199_vm4, %v1155_v61, %v3668_v44 }
 0xd63   :  { %3044 = vmatmul.mubr.msk.f32.vlgmr.msra.gmra.mxu1 %vm308_vm5, %v1157_v62 }
 0xd64   :  { %3056 = vmatpush3.msk.msra.mxu1 %vm1383_vm6, %v1362_v18  ;;  %3057 = vmatprep.mubr.msk.f32.mxu1 %vm1370_vm7, %v1358_v19 }
 0xd65   :  { %3079 = vmatprep.subr.mxu1 %v3288_v2 }
 0xd67   :  { %3058 = vmatmul.mubr.msk.f32.vlgmr.msra.gmra.mxu1 %vm1370_vm7, %v1359_v20 }
 0xe23   :  { %v1227_v63 = vpop.f32.mrf.mxu1 }
 0xe24   :  { %v1228_v1 = vadd.f32 %v3535_v41, %v1227_v63  ;;  %v2763_v41 = vld [vmem:[%s4014_s7 + $0x58] sm:$0xf] }
 0xe25   :  { %v3045_v3 = vpop.f32.mrf.mxu1  ;;  %3047 = vmatpush3.msk.msra.mxu0 %vm203_vm0, %v2763_v41 }
 0xe26   :  { %1238 = vrot.lane.b32.xlu0 %v1228_v1, %s3293_s25  ;;  %v2760_v5 = vmul.f32 -1.442695, %v1228_v1  ;;  %3048 = vmatprep.subr.mxu0 %v3288_v2 }
 0xe27   :  { %3049 = vmatpush3.msra.mxu0 %v2762_v16  ;;  %v3059_v37 = vpop.f32.mrf.mxu1 }
 0xe28   :  { %3212 = vpow2.f32 %v2760_v5  ;;  %3050 = vmatprep.subr.mxu0 %v3288_v2  ;;  %v1459_v5 = vadd.f32 %v3059_v37, %v3769_v38 }
 0xe29   :  { %3051 = vmatpush3.msra.mxu0 %v2761_v24  ;;  %v1453_v42 = vpop.f32.mrf.mxu1 }
 0xe2a   :  { %3063 = vmatprep.subr.mxu0 %v3288_v2  ;;  %v1454_v43 = vadd.f32 %v3769_v38, %v1453_v42 }
 0xe35   :  { %v3213_v8 = vpop.eup %3212 }
 0xe36   :  { %v1234_v9 = vadd.f32 1.0, %v3213_v8 }
 0xe38   :  { %3214 = vrcp.f32 %v1234_v9 }
 0xe45   :  { %v3215_v10 = vpop.eup %3214 }
 0xe46   :  { %v1248_v21 = vsub.f32 1.0, %v3215_v10  ;;  %v1254_v22 = vmul.f32 %v3215_v10, %v3668_v44 }
 0xe98   :  { %v1239_v11 = vpop.permute.xlu0 %1238 }
 0xe99   :  { %v1241_v13 = vmul.f32 %v3215_v10, %v1239_v11 }
 0xe9b   :  { %1243 = vrot.lane.b32.xlu1 %v1241_v13, %s3291_s4 }
 0xf0d   :  { %v1244_v14 = vpop.permute.xlu1 %1243 }
 0xf0e   :  { %v1246_v15 = vadd.f32 %v1244_v14, %v1228_v1 }
 0xf10   :  { %3216 = vtanh.f32 %v1246_v15 }
 0xf1d   :  { %v3217_v17 = vpop.eup %3216 }
 0xf1e   :  { %1250 = vrot.lane.b32.xlu0 %v3217_v17, %s3292_s24 }
 0xf90   :  { %v1251_v25 = vpop.permute.xlu0 %1250 }
 0xf91   :  { %v1253_v28 = vmul.f32 %v1251_v25, %v1248_v21 }
 0xf93   :  { %v1255_v23 = vadd.f32 %v1254_v22, %v1253_v28  ;;  %v1360_v28 = vld [vmem:[%s4015_s8 + $0x10] sm:$0xff] }
 0xf94   :  { %3060 = vmatprep.mubr.msk.f32.mxu1 %vm1370_vm7, %v1360_v28 }
 0xf95   :  { %1261 = vrot.lane.b32.xlu1 %v1255_v23, %s3292_s24 }
0x1007   :  { %v1262_v29 = vpop.permute.xlu1 %1261 }
0x1008   :  { %3053 = vmatmul.mubr.msk.f32.vlgmr.msra.gmra.mxu0 %vm199_vm4, %v1262_v29  ;;  %v1361_v29 = vld [vmem:[%s4015_s8 + $0x18] sm:$0xff] }
0x1009   :  { %3064 = vmatpush3.msk.msra.mxu0 %vm1383_vm6, %v3738_v26  ;;  %3067 = vmatprep.mubr.msk.f32.mxu0 %vm3289_vm3, %v3288_v2 }
0x100a   :  { %3065 = vmatprep.subr.mxu0 %v3288_v2  ;;  %3061 = vmatmul.mubr.msk.f32.gmra.mxu1 %vm1370_vm7, %v1361_v29 }
0x100b   :  { %3066 = vmatpush3.msra.mxu0 %v3744_v27  ;;  %3083 = vmatprep.mubr.msk.f32.mxu1 %vm3289_vm3, %v3288_v2 }
0x100c   :  { %3068 = vmatmul.mubr.msk.f32.vlgmr.msra.gmra.mxu0 %vm1472_vm8, %v1155_v61  ;;  %3070 = vmatprep.subr.mxu0 %v3288_v2 }
0x100d   :  { %3076 = vmatprep.mubr.msk.f32.mxu0 %vm3289_vm3, %v3288_v2  ;;  %3071 = vmatpush3.msk.msra.mxu0 %vm203_vm0, %v3779_v40 }
0x100e   :  { %3072 = vmatprep.subr.mxu0 %v3288_v2 }
0x100f   :  { %3073 = vmatpush3.msra.mxu0 %v3784_v50 }
0x1010   :  { %3074 = vmatprep.subr.mxu0 %v3288_v2 }
0x1011   :  { %3075 = vmatpush3.msra.mxu0 %v3795_v52 }
0x1012   :  { %3086 = vmatprep.subr.mxu0 %v3288_v2 }
0x10c8   :  { %v1334_v30 = vpop.f32.mrf.mxu0 }
0x10c9   :  { %v3757_v31 = vadd.f32 %v1334_v30, %v3686_v46  ;;  %v1686_v30 = vld [vmem:[%s4022_s15] sm:$0xff] }
0x10ca   :  { %v3054_v32 = vpop.f32.mrf.mxu0 }
0x10cc   :  { %v1544_v34 = vpop.f32.mrf.mxu0 }
0x10cd   :  { %v1545_v35 = vadd.f32 %v3762_v33, %v1544_v34 }
0x10ce   :  { %v3069_v36 = vpop.f32.mrf.mxu0 }
0x10cf   :  { %1556 = vrot.lane.b32.xlu0 %v1545_v35, %s3292_s24  ;;  %v1548_v44 = vadd.f32 %v1545_v35, %v1454_v43 }
0x10d1   :  { %v2776_v45 = vmul.f32 -1.442695, %v1548_v44 }
0x10d3   :  { %3218 = vpow2.f32 %v2776_v45 }
0x10e0   :  { %v3219_v0 = vpop.eup %3218 }
0x10e1   :  { %v1552_v46 = vadd.f32 1.0, %v3219_v0 }
0x10e3   :  { %3220 = vrcp.f32 %v1552_v46 }
0x10f0   :  { %v3221_v47 = vpop.eup %3220 }
0x10f1   :  { %v1566_v54 = vsub.f32 1.0, %v3221_v47 }
0x1141   :  { %v1557_v48 = vpop.permute.xlu0 %1556 }
0x1142   :  { %v1559_v49 = vmul.f32 %v3221_v47, %v1557_v48 }
0x1144   :  { %1561 = vrot.lane.b32.xlu1 %v1559_v49, %s3294_s12 }
0x1148   :  { %1572 = vrot.lane.b32.xlu1 %v3695_v60, %s3295_s20 }
0x114c   :  { %1581 = vrot.lane.b32.xlu1 %v1255_v23, %s3295_s20  ;;  %v1687_v23 = vld [vmem:[%s4022_s15 + $0x8] sm:$0x3] }
0x114d   :  { %3080 = vmatpush3.msk.msra.mxu1 %vm1383_vm6, %v1687_v23 }
0x114e   :  { %3081 = vmatprep.subr.mxu1 %v3288_v2 }
0x114f   :  { %3082 = vmatpush3.msra.mxu1 %v1686_v30 }
0x1150   :  { %3093 = vmatprep.subr.mxu1 %v3288_v2 }
0x11b6   :  { %v1562_v4 = vpop.permute.xlu1 %1561 }
0x11b7   :  { %v1564_v6 = vadd.f32 %v1562_v4, %v1454_v43 }
0x11b9   :  { %3222 = vtanh.f32 %v1564_v6  ;;  %v3884_v6 = vpop.f32.mrf.mxu1 }
0x11ba   :  { %v1573_v53 = vpop.permute.xlu1 %1572 }
0x11bb   :  { %v1575_v56 = vmul.f32 %v3221_v47, %v1573_v53 }
0x11be   :  { %v3803_v58 = vpop.permute.xlu1 %1581 }
0x11c6   :  { %v3223_v51 = vpop.eup %3222 }
0x11c7   :  { %1568 = vrot.lane.b32.xlu0 %v3223_v51, %s3295_s20  ;;  %v1463_v51 = vpop.f32.mrf.mxu1 }
0x1239   :  { %v1569_v55 = vpop.permute.xlu0 %1568 }
0x123a   :  { %v1571_v57 = vmul.f32 %v1569_v55, %v1566_v54 }
0x123c   :  { %v3799_v7 = vadd.f32 %v1575_v56, %v1571_v57 }
0x123e   :  { %1578 = vrot.lane.b32.xlu0 %v3799_v7, %s3295_s20 }
0x12b0   :  { %v1579_v59 = vpop.permute.xlu0 %1578 }
0x12b1   :  { %v1584_v12 = vsel %vm1472_vm8, %v1579_v59, %v3803_v58 }
0x12b2   :  { %3077 = vmatmul.mubr.msk.f32.vlgmr.msra.gmra.mxu0 %vm199_vm4, %v1584_v12 }
0x12b3   :  { %3087 = vmatpush3.msk.msra.mxu0 %vm1383_vm6, %v3738_v26  ;;  %3090 = vmatprep.mubr.msk.f32.mxu0 %vm3289_vm3, %v3288_v2 }
0x12b4   :  { %3088 = vmatprep.subr.mxu0 %v3288_v2 }
0x12b5   :  { %3089 = vmatpush3.msra.mxu0 %v3744_v27 }
0x12b6   :  { %3091 = vmatmul.mubr.msk.f32.vlgmr.msra.gmra.mxu0 %vm1472_vm8, %v1579_v59  ;;  %3102 = vmatprep.subr.mxu0 %v3288_v2 }
0x12b7   :  { %3106 = vmatprep.mubr.msk.f32.mxu0 %vm3289_vm3, %v3288_v2 }
0x1372   :  { %v1657_v60 = vpop.f32.mrf.mxu0 }
0x1373   :  { %v1658_v61 = vadd.f32 %v3821_v39, %v1657_v60  ;;  %v1464_v60 = vadd.f32 %v3769_v38, %v1463_v51 }
0x1374   :  { %v3078_v62 = vpop.f32.mrf.mxu0 }
0x1375   :  { %1668 = vrot.lane.b32.xlu0 %v1658_v61, %s3296_s21  ;;  %v2779_v8 = vmul.f32 -1.442695, %v1658_v61 }
0x1376   :  { %v1835_v63 = vpop.f32.mrf.mxu0 }
0x1377   :  { %v1836_v1 = vadd.f32 %v3762_v33, %v1835_v63  ;;  %3224 = vpow2.f32 %v2779_v8 }
0x1378   :  { %v3092_v3 = vpop.f32.mrf.mxu0 }
0x1379   :  { %1847 = vrot.lane.b32.xlu1 %v1836_v1, %s3292_s24  ;;  %v1839_v9 = vadd.f32 %v1836_v1, %v1459_v5 }
0x137b   :  { %v2784_v10 = vmul.f32 -1.442695, %v1839_v9 }
0x137d   :  { %3226 = vpow2.f32 %v2784_v10 }
0x1384   :  { %v3225_v11 = vpop.eup %3224 }
0x1385   :  { %v1664_v13 = vadd.f32 1.0, %v3225_v11 }
0x1387   :  { %3228 = vrcp.f32 %v1664_v13 }
0x138a   :  { %v3227_v14 = vpop.eup %3226 }
0x138b   :  { %v1843_v15 = vadd.f32 1.0, %v3227_v14 }
0x138d   :  { %3230 = vrcp.f32 %v1843_v15 }
0x1394   :  { %v3229_v41 = vpop.eup %3228 }
0x1395   :  { %v1678_v35 = vsub.f32 1.0, %v3229_v41  ;;  %v1684_v37 = vmul.f32 %v3229_v41, %v3803_v58 }
0x139a   :  { %v3231_v17 = vpop.eup %3230 }
0x139b   :  { %v1857_v44 = vsub.f32 1.0, %v3231_v17  ;;  %v1863_v0 = vmul.f32 %v3231_v17, %v3799_v7 }
0x13e7   :  { %v1669_v16 = vpop.permute.xlu0 %1668 }
0x13e8   :  { %v1671_v24 = vmul.f32 %v3229_v41, %v1669_v16 }
0x13ea   :  { %1673 = vrot.lane.b32.xlu0 %v1671_v24, %s3294_s12 }
0x13eb   :  { %v1848_v18 = vpop.permute.xlu1 %1847 }
0x13ec   :  { %v1850_v19 = vmul.f32 %v3231_v17, %v1848_v18  ;;  %v2789_v17 = vld [vmem:[%s4022_s15 + $0x18] sm:$0x3]  ;;  %v2788_v18 = vld [vmem:[%s4022_s15 + $0x10] sm:$0xff] }
0x13ed   :  { %3103 = vmatpush3.msk.msra.mxu0 %vm1383_vm6, %v2789_v17 }
0x13ee   :  { %1852 = vrot.lane.b32.xlu1 %v1850_v19, %s3294_s12  ;;  %3104 = vmatprep.subr.mxu0 %v3288_v2 }
0x13ef   :  { %3105 = vmatpush3.msra.mxu0 %v2788_v18 }
0x13f0   :  { %3116 = vmatprep.subr.mxu0 %v3288_v2 }
0x145c   :  { %v1674_v20 = vpop.permute.xlu0 %1673 }
0x145d   :  { %v1676_v21 = vadd.f32 %v1674_v20, %v1658_v61 }
0x145f   :  { %3232 = vtanh.f32 %v1676_v21 }
0x1460   :  { %v1853_v25 = vpop.permute.xlu1 %1852 }
0x1461   :  { %v1855_v22 = vadd.f32 %v1853_v25, %v1459_v5 }
0x1463   :  { %3234 = vtanh.f32 %v1855_v22 }
0x146c   :  { %v3233_v32 = vpop.eup %3232 }
0x146d   :  { %1680 = vrot.lane.b32.xlu0 %v3233_v32, %s3295_s20 }
0x1470   :  { %v3235_v34 = vpop.eup %3234 }
0x1471   :  { %1859 = vrot.lane.b32.xlu1 %v3235_v34, %s3295_s20 }
0x14df   :  { %v1681_v36 = vpop.permute.xlu0 %1680 }
0x14e0   :  { %v1683_v42 = vmul.f32 %v1681_v36, %v1678_v35 }
0x14e2   :  { %v3852_v43 = vadd.f32 %v1684_v37, %v1683_v42 }
0x14e3   :  { %v1860_v45 = vpop.permute.xlu1 %1859 }
0x14e4   :  { %v1862_v46 = vmul.f32 %v1860_v45, %v1857_v44  ;;  %1689 = vrot.lane.b32.xlu0 %v3852_v43, %s3295_s20 }
0x14e6   :  { %v3857_v47 = vadd.f32 %v1863_v0, %v1862_v46 }
0x14e8   :  { %1866 = vrot.lane.b32.xlu1 %v3857_v47, %s3295_s20 }
0x1556   :  { %v1690_v48 = vpop.permute.xlu0 %1689 }
0x1557   :  { %3084 = vmatmul.mubr.msk.f32.vlgmr.msra.gmra.mxu1 %vm1472_vm8, %v1690_v48 }
0x1558   :  { %3094 = vmatpush3.msk.msra.mxu1 %vm203_vm0, %v3779_v40  ;;  %3099 = vmatprep.mubr.msk.f32.mxu1 %vm3289_vm3, %v3288_v2 }
0x1559   :  { %3095 = vmatprep.subr.mxu1 %v3288_v2 }
0x155a   :  { %3096 = vmatpush3.msra.mxu1 %v3784_v50  ;;  %v1867_v49 = vpop.permute.xlu1 %1866 }
0x155b   :  { %3097 = vmatprep.subr.mxu1 %v3288_v2  ;;  %v1869_v4 = vsel %vm1472_vm8, %v1867_v49, %v3852_v43 }
0x155c   :  { %3098 = vmatpush3.msra.mxu1 %v3795_v52 }
0x155d   :  { %3100 = vmatmul.mubr.msk.f32.vlgmr.msra.gmra.mxu1 %vm199_vm4, %v1869_v4  ;;  %3109 = vmatprep.subr.mxu1 %v3288_v2 }
0x155e   :  { %3110 = vmatpush3.msk.msra.mxu1 %vm1383_vm6, %v3738_v26  ;;  %3113 = vmatprep.mubr.msk.f32.mxu1 %vm3289_vm3, %v3288_v2 }
0x155f   :  { %3111 = vmatprep.subr.mxu1 %v3288_v2 }
0x1560   :  { %3112 = vmatpush3.msra.mxu1 %v3744_v27 }
0x1561   :  { %3114 = vmatmul.mubr.msk.f32.vlgmr.msra.gmra.mxu1 %vm1472_vm8, %v1867_v49  ;;  %3125 = vmatprep.subr.mxu1 %v3288_v2  ;;  %v1469_v49 = vadd.f32 %v3884_v6, %v3769_v38 }
0x1562   :  { %3129 = vmatprep.mubr.msk.f32.mxu1 %vm3289_vm3, %v3288_v2 }
0x1617   :  { %v1762_v53 = vpop.f32.mrf.mxu1 }
0x1618   :  { %v3887_v54 = vadd.f32 %v1762_v53, %v3757_v31 }
0x1619   :  { %v3085_v55 = vpop.f32.mrf.mxu1 }
0x161d   :  { %v1939_v56 = vpop.f32.mrf.mxu1 }
0x161e   :  { %v1940_v57 = vadd.f32 %v3821_v39, %v1939_v56 }
0x161f   :  { %v3101_v7 = vpop.f32.mrf.mxu1 }
0x1620   :  { %1950 = vrot.lane.b32.xlu0 %v1940_v57, %s3296_s21  ;;  %v2787_v61 = vmul.f32 -1.442695, %v1940_v57 }
0x1621   :  { %v2118_v58 = vpop.f32.mrf.mxu1 }
0x1622   :  { %v2119_v59 = vadd.f32 %v3762_v33, %v2118_v58  ;;  %3236 = vpow2.f32 %v2787_v61 }
0x1623   :  { %v3115_v12 = vpop.f32.mrf.mxu1 }
0x1624   :  { %2130 = vrot.lane.b32.xlu1 %v2119_v59, %s3292_s24  ;;  %v2122_v62 = vadd.f32 %v2119_v59, %v1464_v60 }
0x1626   :  { %v2794_v31 = vmul.f32 -1.442695, %v2122_v62 }
0x1628   :  { %3238 = vpow2.f32 %v2794_v31  ;;  %v2799_v31 = vld [vmem:[%s4022_s15 + $0x28] sm:$0x3] }
0x1629   :  { %3126 = vmatpush3.msk.msra.mxu1 %vm1383_vm6, %v2799_v31 }
0x162a   :  { %3127 = vmatprep.subr.mxu1 %v3288_v2 }
0x162f   :  { %v3237_v63 = vpop.eup %3236 }
0x1630   :  { %v1946_v1 = vadd.f32 1.0, %v3237_v63  ;;  %v2798_v63 = vld [vmem:[%s4022_s15 + $0x20] sm:$0xff] }
0x1631   :  { %3128 = vmatpush3.msra.mxu1 %v2798_v63 }
0x1632   :  { %3240 = vrcp.f32 %v1946_v1  ;;  %3139 = vmatprep.subr.mxu1 %v3288_v2 }
0x1635   :  { %v3239_v3 = vpop.eup %3238 }
0x1636   :  { %v2126_v5 = vadd.f32 1.0, %v3239_v3 }
0x1638   :  { %3242 = vrcp.f32 %v2126_v5 }
0x163f   :  { %v3241_v8 = vpop.eup %3240 }
0x1640   :  { %v1960_v21 = vsub.f32 1.0, %v3241_v8  ;;  %v1966_v22 = vmul.f32 %v3241_v8, %v3852_v43 }
0x1645   :  { %v3243_v11 = vpop.eup %3242 }
0x1646   :  { %v2140_v29 = vsub.f32 1.0, %v3243_v11  ;;  %v2146_v32 = vmul.f32 %v3243_v11, %v3857_v47 }
0x1692   :  { %v1951_v9 = vpop.permute.xlu0 %1950 }
0x1693   :  { %v1953_v10 = vmul.f32 %v3241_v8, %v1951_v9 }
0x1695   :  { %1955 = vrot.lane.b32.xlu0 %v1953_v10, %s3294_s12 }
0x1696   :  { %v2131_v13 = vpop.permute.xlu1 %2130 }
0x1697   :  { %v2133_v14 = vmul.f32 %v3243_v11, %v2131_v13 }
0x1699   :  { %2135 = vrot.lane.b32.xlu1 %v2133_v14, %s3294_s12 }
0x1707   :  { %v1956_v15 = vpop.permute.xlu0 %1955 }
0x1708   :  { %v1958_v41 = vadd.f32 %v1956_v15, %v1940_v57 }
0x170a   :  { %3244 = vtanh.f32 %v1958_v41 }
0x170b   :  { %v2136_v16 = vpop.permute.xlu1 %2135 }
0x170c   :  { %v2138_v24 = vadd.f32 %v2136_v16, %v1464_v60 }
0x170e   :  { %3246 = vtanh.f32 %v2138_v24 }
0x1717   :  { %v3245_v19 = vpop.eup %3244 }
0x1718   :  { %1962 = vrot.lane.b32.xlu0 %v3245_v19, %s3295_s20 }
0x171b   :  { %v3247_v20 = vpop.eup %3246 }
0x171c   :  { %2142 = vrot.lane.b32.xlu1 %v3247_v20, %s3295_s20 }
0x178a   :  { %v1963_v25 = vpop.permute.xlu0 %1962 }
0x178b   :  { %v1965_v28 = vmul.f32 %v1963_v25, %v1960_v21 }
0x178d   :  { %v3908_v23 = vadd.f32 %v1966_v22, %v1965_v28 }
0x178e   :  { %v2143_v30 = vpop.permute.xlu1 %2142 }
0x178f   :  { %v2145_v34 = vmul.f32 %v2143_v30, %v2140_v29  ;;  %1972 = vrot.lane.b32.xlu0 %v3908_v23, %s3295_s20 }
0x1791   :  { %v3913_v35 = vadd.f32 %v2146_v32, %v2145_v34 }
0x1793   :  { %2149 = vrot.lane.b32.xlu1 %v3913_v35, %s3295_s20 }
0x1801   :  { %v1973_v36 = vpop.permute.xlu0 %1972 }
0x1802   :  { %3107 = vmatmul.mubr.msk.f32.vlgmr.msra.gmra.mxu0 %vm1472_vm8, %v1973_v36 }
0x1803   :  { %3117 = vmatpush3.msk.msra.mxu0 %vm203_vm0, %v3779_v40  ;;  %3122 = vmatprep.mubr.msk.f32.mxu0 %vm3289_vm3, %v3288_v2 }
0x1804   :  { %3118 = vmatprep.subr.mxu0 %v3288_v2 }
0x1805   :  { %3119 = vmatpush3.msra.mxu0 %v3784_v50  ;;  %v2150_v37 = vpop.permute.xlu1 %2149 }
0x1806   :  { %3120 = vmatprep.subr.mxu0 %v3288_v2  ;;  %v2152_v42 = vsel %vm1472_vm8, %v2150_v37, %v3908_v23 }
0x1807   :  { %3121 = vmatpush3.msra.mxu0 %v3795_v52 }
0x1808   :  { %3123 = vmatmul.mubr.msk.f32.vlgmr.msra.gmra.mxu0 %vm199_vm4, %v2152_v42  ;;  %3132 = vmatprep.subr.mxu0 %v3288_v2 }
0x1809   :  { %3133 = vmatpush3.msk.msra.mxu0 %vm1383_vm6, %v3738_v26  ;;  %3136 = vmatprep.mubr.msk.f32.mxu0 %vm3289_vm3, %v3288_v2 }
0x180a   :  { %3134 = vmatprep.subr.mxu0 %v3288_v2 }
0x180b   :  { %3135 = vmatpush3.msra.mxu0 %v3744_v27 }
0x180c   :  { %3137 = vmatmul.mubr.msk.f32.vlgmr.msra.gmra.mxu0 %vm1472_vm8, %v2150_v37  ;;  %3148 = vmatprep.subr.mxu0 %v3288_v2 }
0x180d   :  { %3152 = vmatprep.mubr.msk.f32.mxu0 %vm3289_vm3, %v3288_v2 }
0x18c2   :  { %v2045_v43 = vpop.f32.mrf.mxu0 }
0x18c3   :  { %v3941_v44 = vadd.f32 %v2045_v43, %v3887_v54 }
0x18c4   :  { %v3108_v45 = vpop.f32.mrf.mxu0 }
0x18c8   :  { %v2222_v26 = vpop.f32.mrf.mxu0 }
0x18c9   :  { %v2223_v0 = vadd.f32 %v3821_v39, %v2222_v26 }
0x18ca   :  { %v3124_v46 = vpop.f32.mrf.mxu0 }
0x18cb   :  { %2233 = vrot.lane.b32.xlu0 %v2223_v0, %s3296_s21  ;;  %v2797_v4 = vmul.f32 -1.442695, %v2223_v0  ;;  %v2812_v46 = vld [vmem:[%s4023_s16] ss:$0 sm:$0xff] }
0x18cc   :  { %v2401_v47 = vpop.f32.mrf.mxu0 }
0x18cd   :  { %v2402_v27 = vadd.f32 %v3762_v33, %v2401_v47  ;;  %3248 = vpow2.f32 %v2797_v4 }
0x18ce   :  { %v3138_v48 = vpop.f32.mrf.mxu0 }
0x18cf   :  { %2413 = vrot.lane.b32.xlu1 %v2402_v27, %s3292_s24  ;;  %v2405_v51 = vadd.f32 %v2402_v27, %v1469_v49 }
0x18d1   :  { %v2804_v53 = vmul.f32 -1.442695, %v2405_v51 }
0x18d3   :  { %3250 = vpow2.f32 %v2804_v53 }
0x18da   :  { %v3249_v54 = vpop.eup %3248 }
0x18db   :  { %v2229_v55 = vadd.f32 1.0, %v3249_v54 }
0x18dd   :  { %3252 = vrcp.f32 %v2229_v55 }
0x18e0   :  { %v3251_v56 = vpop.eup %3250 }
0x18e1   :  { %v2409_v57 = vadd.f32 1.0, %v3251_v56 }
0x18e3   :  { %3254 = vrcp.f32 %v2409_v57 }
0x18ea   :  { %v3253_v7 = vpop.eup %3252 }
0x18eb   :  { %v2243_v5 = vsub.f32 1.0, %v3253_v7  ;;  %v2249_v9 = vmul.f32 %v3253_v7, %v3908_v23 }
0x18f0   :  { %v3255_v59 = vpop.eup %3254 }
0x18f1   :  { %v2423_v13 = vsub.f32 1.0, %v3255_v59  ;;  %v2429_v15 = vmul.f32 %v3255_v59, %v3913_v35  ;;  %v2808_v35 = vld [vmem:[%s4022_s15 + $0x30] sm:$0xff] }
0x193d   :  { %v2234_v58 = vpop.permute.xlu0 %2233 }
0x193e   :  { %v2236_v33 = vmul.f32 %v3253_v7, %v2234_v58 }
0x1940   :  { %2238 = vrot.lane.b32.xlu0 %v2236_v33, %s3294_s12 }
0x1941   :  { %v2414_v12 = vpop.permute.xlu1 %2413 }
0x1942   :  { %v2416_v60 = vmul.f32 %v3255_v59, %v2414_v12 }
0x1944   :  { %2418 = vrot.lane.b32.xlu1 %v2416_v60, %s3294_s12 }
0x19b2   :  { %v2239_v38 = vpop.permute.xlu0 %2238 }
0x19b3   :  { %v2241_v6 = vadd.f32 %v2239_v38, %v2223_v0  ;;  %v2624_v0 = vld [vmem:[%s4024_s17] sm:$0xff] }
0x19b5   :  { %3256 = vtanh.f32 %v2241_v6 }
0x19b6   :  { %v2419_v61 = vpop.permute.xlu1 %2418 }
0x19b7   :  { %v2421_v62 = vadd.f32 %v2419_v61, %v1469_v49  ;;  %v2813_v49 = vld [vmem:[%s4025_s18] ss:$0 sm:$0xff] }
0x19b9   :  { %3258 = vtanh.f32 %v2421_v62 }
0x19c2   :  { %v3257_v1 = vpop.eup %3256 }
0x19c3   :  { %2245 = vrot.lane.b32.xlu0 %v3257_v1, %s3295_s20 }
0x19c6   :  { %v3259_v3 = vpop.eup %3258 }
0x19c7   :  { %2425 = vrot.lane.b32.xlu1 %v3259_v3, %s3295_s20 }
0x1a35   :  { %v2246_v8 = vpop.permute.xlu0 %2245 }
0x1a36   :  { %v2248_v10 = vmul.f32 %v2246_v8, %v2243_v5 }
0x1a38   :  { %v2250_v11 = vadd.f32 %v2249_v9, %v2248_v10 }
0x1a39   :  { %v2426_v14 = vpop.permute.xlu1 %2425 }
0x1a3a   :  { %v2428_v41 = vmul.f32 %v2426_v14, %v2423_v13  ;;  %2255 = vrot.lane.b32.xlu0 %v2250_v11, %s3295_s20 }
0x1a3c   :  { %v2430_v16 = vadd.f32 %v2429_v15, %v2428_v41 }
0x1a3e   :  { %2432 = vrot.lane.b32.xlu1 %v2430_v16, %s3295_s20 }
0x1aac   :  { %v2256_v24 = vpop.permute.xlu0 %2255 }
0x1aad   :  { %3130 = vmatmul.mubr.msk.f32.vlgmr.msra.gmra.mxu1 %vm1472_vm8, %v2256_v24 }
0x1aae   :  { %3140 = vmatpush3.msk.msra.mxu1 %vm203_vm0, %v3779_v40  ;;  %3145 = vmatprep.mubr.msk.f32.mxu1 %vm3289_vm3, %v3288_v2 }
0x1aaf   :  { %3141 = vmatprep.subr.mxu1 %v3288_v2 }
0x1ab0   :  { %3142 = vmatpush3.msra.mxu1 %v3784_v50  ;;  %v2433_v17 = vpop.permute.xlu1 %2432 }
0x1ab1   :  { %3143 = vmatprep.subr.mxu1 %v3288_v2  ;;  %v2435_v18 = vsel %vm1472_vm8, %v2433_v17, %v2250_v11 }
0x1ab2   :  { %3144 = vmatpush3.msra.mxu1 %v3795_v52 }
0x1ab3   :  { %3146 = vmatmul.mubr.msk.f32.vlgmr.msra.gmra.mxu1 %vm199_vm4, %v2435_v18  ;;  %3155 = vmatprep.subr.mxu1 %v3288_v2 }
0x1ab4   :  { %3157 = vmatprep.mubr.msk.f32.mxu1 %vm3289_vm3, %v3288_v2  ;;  %3156 = vmatpush3.msra.mxu1 %v2624_v0 }
0x1b6d   :  { %v2328_v40 = vpop.f32.mrf.mxu1 }
0x1b6e   :  { %v2332_v19 = vadd.f32 %v2328_v40, %v3941_v44 }
0x1b6f   :  { %v3131_v20 = vpop.f32.mrf.mxu1 }
0x1b73   :  { %v2505_v21 = vpop.f32.mrf.mxu1 }
0x1b74   :  { %v2506_v50 = vadd.f32 %v3821_v39, %v2505_v21  ;;  %v2809_v39 = vld [vmem:[%s4022_s15 + $0x38] sm:$0x3] }
0x1b75   :  { %v3147_v25 = vpop.f32.mrf.mxu1  ;;  %3149 = vmatpush3.msk.msra.mxu0 %vm1383_vm6, %v2809_v39 }
0x1b76   :  { %2516 = vrot.lane.b32.xlu0 %v2506_v50, %s3296_s21  ;;  %v2807_v22 = vmul.f32 -1.442695, %v2506_v50  ;;  %3150 = vmatprep.subr.mxu0 %v3288_v2  ;;  %s3297_s21 = smov [#allocation2]  }
0x1b77   :  { %3151 = vmatpush3.msra.mxu0 %v2808_v35  ;;  %s2714_s14 = sshll.u32 %s3297_s21, 4  ;;  %s2715_s14 = int_to_ptr.vmem [resolvable:$true] %s2714_s14 }
0x1b78   :  { %3260 = vpow2.f32 %v2807_v22  ;;  %s3266_s17 = scalar_lea.vmem %s2715_s14, 128  ;;  %p3271_p1 = scmp.lt.s32.totalorder %s2715_s14, %s2715_s14 }
0x1b79   :  { %p3267_p0 = scmp.ne.s32.totalorder %s2715_s14, %s3266_s17  ;;  %p3272_p2 = scmp.lt.s32.totalorder %s3266_s17, %s3266_s17 }
0x1b7b   :  { %p3273_p3 = por %p3272_p2, %p3271_p1 }
0x1b7d   :  { %p3274_p4 = pnand %p3273_p3, %p3267_p0 }
0x1b85   :  { %v3261_v52 = vpop.eup %3260 }
0x1b86   :  { %v2512_v28 = vadd.f32 1.0, %v3261_v52 }
0x1b88   :  { %3262 = vrcp.f32 %v2512_v28 }
0x1b95   :  { %v3263_v23 = vpop.eup %3262 }
0x1b96   :  { %v2526_v37 = vsub.f32 1.0, %v3263_v23  ;;  %v2532_v43 = vmul.f32 %v3263_v23, %v2250_v11 }
0x1be8   :  { %v2517_v29 = vpop.permute.xlu0 %2516 }
0x1be9   :  { %v2519_v30 = vmul.f32 %v3263_v23, %v2517_v29 }
0x1beb   :  { %2521 = vrot.lane.b32.xlu1 %v2519_v30, %s3294_s12 }
0x1c5d   :  { %v2522_v32 = vpop.permute.xlu1 %2521 }
0x1c5e   :  { %v2524_v34 = vadd.f32 %v2522_v32, %v2506_v50 }
0x1c60   :  { %3264 = vtanh.f32 %v2524_v34 }
0x1c6d   :  { %v3265_v36 = vpop.eup %3264 }
0x1c6e   :  { %2528 = vrot.lane.b32.xlu0 %v3265_v36, %s3295_s20 }
0x1ce0   :  { %v2529_v42 = vpop.permute.xlu0 %2528 }
0x1ce1   :  { %v2531_v44 = vmul.f32 %v2529_v42, %v2526_v37 }
0x1ce3   :  { %v2533_v45 = vadd.f32 %v2532_v43, %v2531_v44 }
0x1ce5   :  { %2538 = vrot.lane.b32.xlu1 %v2533_v45, %s3295_s20 }
0x1d57   :  { %v2539_v26 = vpop.permute.xlu1 %2538 }
0x1d58   :  { %3153 = vmatmul.mubr.msk.f32.vlgmr.msra.gmra.mxu0 %vm1472_vm8, %v2539_v26 }
0x1e18   :  { %v2611_v2 = vpop.f32.mrf.mxu0 }
0x1e19   :  { %v2615_v47 = vadd.f32 %v2611_v2, %v2332_v19 }
0x1e1a   :  { %v3154_v27 = vpop.f32.mrf.mxu0 }
0x1e1b   :  { %v2623_v48 = vadd.f32 %v2812_v46, %v2615_v47 }
0x1e1d   :  { %3158 = vmatmul.mubr.msk.f32.vlgmr.msra.gmra.mxu1 %vm2632_vm9, %v2623_v48 }
0x1edd   :  { %v2702_v4 = vpop.f32.mrf.mxu1 }
0x1ede   :  { %v2703_v51 = vadd.f32 %v2813_v49, %v2702_v4 }
0x1edf   :  { %v3159_v53 = vpop.f32.mrf.mxu1 }
0x1ee0   :  { %2707 = vst.msk [vmem:[#allocation2] sm:$0xff] %vm2706_vm10, %v2703_v51 }
0x1ee1   :  { %3277 = shalt.err (!%p3274_p4)
}
0x1ee2   :  { %2717 = dma.vmem_to_hbm [thread:$0]  %s2715_s14, 128, %s4026_s19, [#allocation3]  }
0x1ee3   :  { %3286 = dma.done.wait [#allocation3], 128  }
0x1ee4   :  { %3287 = vsyncadd [#allocation3], 4294967168 }
0x1ee5   :  { %2721 = vsyncpa [#allocation3], 1 }

</bundles_post_ra>
